<compile_context>
chip_gen: v6e
topology: v6e:2x2x1
jax: 0.10.0
libtpu: 0.0.40
codegen_flags: <defaults>
</compile_context>

<pallas_src>
import functools
import math

import jax
import jax.numpy as jnp
from jax.experimental import pallas as pl
from jax.experimental.pallas import tpu as pltpu

_LANE = 128
_SUBLANE = 16   # bf16 sublane tile; also satisfies the f32 (8) requirement


def _round_up(n, m):
    return ((n + m - 1) // m) * m


# ----------------------------- fused layer-stack kernel -----------------------------
def _resin_stack_kernel(alpha, dp,
                        x0_hbm, e0_hbm, src_hbm, dst_hbm, dstt_hbm,
                        w1_ref, b1_ref, w2_ref, b2_ref,
                        v1_ref, c1_ref, v2_ref, c2_ref,
                        xs_ref, es_ref,
                        x_scr, e_scr, src_scr, dst_scr, dstt_scr, sem):
    layer = pl.program_id(0)

    # One-time DMA of the layer-invariant operands into single-buffered VMEM scratch.
    @pl.when(layer == 0)
    def _():
        copies = (
            pltpu.make_async_copy(x0_hbm, x_scr, sem.at[0]),
            pltpu.make_async_copy(e0_hbm, e_scr, sem.at[1]),
            pltpu.make_async_copy(src_hbm, src_scr, sem.at[2]),
            pltpu.make_async_copy(dst_hbm, dst_scr, sem.at[3]),
            pltpu.make_async_copy(dstt_hbm, dstt_scr, sem.at[4]),
        )
        for cp in copies:
            cp.start()
        for cp in copies:
            cp.wait()

    x = x_scr[...]                                   # (Np, dp) f32 carry
    e = e_scr[...]                                   # (Ep, dp) f32 carry
    x_bf = x.astype(jnp.bfloat16)
    e_bf = e.astype(jnp.bfloat16)

    # --- gather node features onto edges: bf16 x bf16 one-hot incidence matmuls (exact)
    x_src = jnp.dot(src_scr[...], x_bf, preferred_element_type=jnp.float32)   # x_j (Ep, dp)
    x_dst = jnp.dot(dst_scr[...], x_bf, preferred_element_type=jnp.float32)   # x_i (Ep, dp)

    # --- relational MLP: 3 accumulating dots against static slices of W1 (no concat)
    h = (jnp.dot(x_dst.astype(jnp.bfloat16), w1_ref[pl.ds(0 * dp, dp), :],
                 preferred_element_type=jnp.float32)
         + jnp.dot(x_src.astype(jnp.bfloat16), w1_ref[pl.ds(1 * dp, dp), :],
                   preferred_element_type=jnp.float32)
         + jnp.dot(e_bf, w1_ref[pl.ds(2 * dp, dp), :],
                   preferred_element_type=jnp.float32)
         + b1_ref[...])
    h = jnp.maximum(h, 0.0)
    e_new = jnp.dot(h.astype(jnp.bfloat16), w2_ref[...],
                    preferred_element_type=jnp.float32) + b2_ref[...]

    # --- scatter-add messages onto destination nodes (lane-major transposed incidence)
    aggr = jnp.dot(dstt_scr[...], e_new.astype(jnp.bfloat16),
                   preferred_element_type=jnp.float32)                        # (Np, dp)

    # --- object MLP: 2 accumulating dots against static slices of V1 (no concat)
    g = (jnp.dot(x_bf, v1_ref[pl.ds(0 * dp, dp), :], preferred_element_type=jnp.float32)
         + jnp.dot(aggr.astype(jnp.bfloat16), v1_ref[pl.ds(1 * dp, dp), :],
                   preferred_element_type=jnp.float32)
         + c1_ref[...])
    g = jnp.maximum(g, 0.0)
    delta = jnp.dot(g.astype(jnp.bfloat16), v2_ref[...],
                    preferred_element_type=jnp.float32) + c2_ref[...]

    # --- convex-combination residual (residue encoder = Identity), f32
    if math.isclose(alpha, 0.0):
        x_new = jnp.maximum(delta, 0.0)
    else:
        x_new = alpha * x + (1.0 - alpha) * jnp.maximum(delta, 0.0)

    x_scr[...] = x_new
    e_scr[...] = e_new
    xs_ref[...] = x_new.astype(xs_ref.dtype)    # bf16, lane-dense writeback
    es_ref[...] = e_new.astype(es_ref.dtype)


# ----------------------------- wrapper: pad, stack, call -----------------------------
def _stack_padded_params(layer_params, dp):
    w1s, b1s, w2s, b2s, v1s, c1s, v2s, c2s = ([] for _ in range(8))
    for p in layer_params:
        node_dim = p["w1a"].shape[0]
        edge_indim = p["w1c"].shape[0]
        rel_hidden = p["w1a"].shape[1]
        edge_outdim = p["w2"].shape[1]
        obj_hidden = p["v1a"].shape[1]

        w1 = jnp.zeros((3 * dp, dp), jnp.float32)
        w1 = w1.at[:node_dim, :rel_hidden].set(p["w1a"])                     # x_dst block
        w1 = w1.at[dp:dp + node_dim, :rel_hidden].set(p["w1b"])              # x_src block
        w1 = w1.at[2 * dp:2 * dp + edge_indim, :rel_hidden].set(p["w1c"])    # edge block
        w1s.append(w1.astype(jnp.bfloat16))
        b1s.append(jnp.zeros((1, dp), jnp.float32).at[:, :rel_hidden].set(p["b1"]))
        w2s.append(jnp.zeros((dp, dp), jnp.float32)
                   .at[:rel_hidden, :edge_outdim].set(p["w2"]).astype(jnp.bfloat16))
        b2s.append(jnp.zeros((1, dp), jnp.float32).at[:, :edge_outdim].set(p["b2"]))

        v1 = jnp.zeros((2 * dp, dp), jnp.float32)
        v1 = v1.at[:node_dim, :obj_hidden].set(p["v1a"])                     # x block
        v1 = v1.at[dp:dp + edge_outdim, :obj_hidden].set(p["v1b"])           # aggr block
        v1s.append(v1.astype(jnp.bfloat16))
        c1s.append(jnp.zeros((1, dp), jnp.float32).at[:, :obj_hidden].set(p["c1"]))
        v2s.append(jnp.zeros((dp, dp), jnp.float32)
                   .at[:obj_hidden, :node_dim].set(p["v2"]).astype(jnp.bfloat16))
        c2s.append(jnp.zeros((1, dp), jnp.float32).at[:, :node_dim].set(p["c2"]))

    stack = lambda xs: jnp.stack(xs, axis=0)
    return (stack(w1s), stack(b1s), stack(w2s), stack(b2s),
            stack(v1s), stack(c1s), stack(v2s), stack(c2s))


def resin_forward(x, edge_index, edge_attr, layer_params, alpha):
    """ResIN.forward: returns (x, xs, edge_attrs) exactly like the torch module."""
    N, node_dim = x.shape
    E, edge_indim = edge_attr.shape
    L = len(layer_params)
    node_outdims = [p["v2"].shape[1] for p in layer_params]
    edge_outdims = [p["w2"].shape[1] for p in layer_params]

    dims = [node_dim, edge_indim]
    for p in layer_params:
        dims += [p["w1a"].shape[1], p["w2"].shape[1], p["v1a"].shape[1], p["v2"].shape[1]]
    dp = _round_up(max(dims), _LANE)          # common padded lane width (128 here)
    np_ = _round_up(N, _SUBLANE)              # sublane-aligned row counts
    ep_ = _round_up(E, _SUBLANE)

    # Dense incidence (one-hot) matrices in bf16 (0/1 exact). Padded edges get an
    # out-of-range index -> all-zero rows, so they never touch real nodes.
    src = edge_index[0].astype(jnp.int32)     # x_j indices
    dst = edge_index[1].astype(jnp.int32)     # x_i indices (messages aggregated here)
    src_p = jnp.full((ep_,), np_, jnp.int32).at[:E].set(src)
    dst_p = jnp.full((ep_,), np_, jnp.int32).at[:E].set(dst)
    src_oh = jax.nn.one_hot(src_p, np_, dtype=jnp.bfloat16)     # (Ep, Np)
    dst_oh = jax.nn.one_hot(dst_p, np_, dtype=jnp.bfloat16)     # (Ep, Np)
    dst_oh_t = dst_oh.T                                         # (Np, Ep) lane-major scatter

    x0p = jnp.zeros((np_, dp), jnp.float32).at[:N, :node_dim].set(x)
    e0p = jnp.zeros((ep_, dp), jnp.float32).at[:E, :edge_indim].set(edge_attr)

    W1, B1, W2, B2, V1, C1, V2, C2 = _stack_padded_params(layer_params, dp)

    # Explicit VMEM budget (single-buffered incidence + carries, double-buffered weights
    # and output blocks, headroom for f32 intermediates); capped at 64 MiB for v7x.
    f32b, bf16b = 4, 2
    vmem_needed = (
        3 * ep_ * np_ * bf16b                         # resident incidence scratch
        + (np_ + ep_) * dp * f32b                     # node / edge carries
        + 2 * (7 * dp * dp * bf16b + 4 * dp * f32b)   # per-layer weights (double-buffered)
        + 2 * (np_ + ep_) * dp * bf16b                # output blocks (double-buffered)
        + (8 * ep_ + 4 * np_) * dp * f32b             # intermediates headroom
    )
    vmem_limit = int(min(64 * 2**20, max(32 * 2**20, 2 * vmem_needed)))

    kernel = functools.partial(_resin_stack_kernel, float(alpha), dp)
    per_layer = lambda l: (l, 0, 0)          # streamed / written per layer
    any_spec = pl.BlockSpec(memory_space=pl.ANY)   # raw HBM ref, DMA'd manually once

    xs_pad, es_pad = pl.pallas_call(
        kernel,
        out_shape=(jax.ShapeDtypeStruct((L, np_, dp), jnp.bfloat16),
                   jax.ShapeDtypeStruct((L, ep_, dp), jnp.bfloat16)),
        grid_spec=pltpu.PrefetchScalarGridSpec(
            num_scalar_prefetch=0,
            grid=(L,),
            in_specs=[
                any_spec,                                     # x0 (padded, f32)
                any_spec,                                     # edge_attr0 (padded, f32)
                any_spec,                                     # src one-hot (bf16)
                any_spec,                                     # dst one-hot (bf16)
                any_spec,                                     # dst one-hot^T (bf16)
                pl.BlockSpec((None, 3 * dp, dp), per_layer),  # W1 (3 stacked blocks, bf16)
                pl.BlockSpec((None, 1, dp), per_layer),       # b1 (f32)
                pl.BlockSpec((None, dp, dp), per_layer),      # W2 (bf16)
                pl.BlockSpec((None, 1, dp), per_layer),       # b2 (f32)
                pl.BlockSpec((None, 2 * dp, dp), per_layer),  # V1 (2 stacked blocks, bf16)
                pl.BlockSpec((None, 1, dp), per_layer),       # c1 (f32)
                pl.BlockSpec((None, dp, dp), per_layer),      # V2 (bf16)
                pl.BlockSpec((None, 1, dp), per_layer),       # c2 (f32)
            ],
            out_specs=(pl.BlockSpec((None, np_, dp), per_layer),
                       pl.BlockSpec((None, ep_, dp), per_layer)),
            scratch_shapes=[
                pltpu.VMEM((np_, dp), jnp.float32),      # node-feature carry
                pltpu.VMEM((ep_, dp), jnp.float32),      # edge-feature carry
                pltpu.VMEM((ep_, np_), jnp.bfloat16),    # src one-hot (resident)
                pltpu.VMEM((ep_, np_), jnp.bfloat16),    # dst one-hot (resident)
                pltpu.VMEM((np_, ep_), jnp.bfloat16),    # dst one-hot^T (resident)
                pltpu.SemaphoreType.DMA((5,)),           # one-time load semaphores
            ],
        ),
        compiler_params=pltpu.CompilerParams(
            dimension_semantics=("arbitrary",),
            vmem_limit_bytes=vmem_limit),
    )(x0p, e0p, src_oh, dst_oh, dst_oh_t, W1, B1, W2, B2, V1, C1, V2, C2)

    xs = [x]
    edge_attrs = [edge_attr]
    for l in range(L):
        xs.append(xs_pad[l, :N, :node_outdims[l]].astype(jnp.float32))
        edge_attrs.append(es_pad[l, :E, :edge_outdims[l]].astype(jnp.float32))
    return xs[-1], xs, edge_attrs


# ------------------------- pure-JAX reference (for checking) -------------------------
def _reference_layer(x, edge_attr, src, dst, p, alpha):
    x_src = x[src]
    x_dst = x[dst]
    h = jnp.maximum(x_dst @ p["w1a"] + x_src @ p["w1b"] + edge_attr @ p["w1c"] + p["b1"], 0.0)
    e_new = h @ p["w2"] + p["b2"]
    aggr = jnp.zeros((x.shape[0], e_new.shape[1]), jnp.float32).at[dst].add(e_new)
    g = jnp.maximum(x @ p["v1a"] + aggr @ p["v1b"] + p["c1"], 0.0)
    delta = g @ p["v2"] + p["c2"]
    if math.isclose(alpha, 0.0):
        x_new = jnp.maximum(delta, 0.0)
    else:
        x_new = alpha * x + (1.0 - alpha) * jnp.maximum(delta, 0.0)
    return x_new, e_new


def _reference_forward(x, edge_index, edge_attr, layer_params, alpha):
    src, dst = edge_index[0], edge_index[1]
    edge_attrs = [edge_attr]
    xs = [x]
    for p in layer_params:
        x, edge_attr = _reference_layer(x, edge_attr, src, dst, p, alpha)
        xs.append(x)
        edge_attrs.append(edge_attr)
    return x, xs, edge_attrs


# ------------------------- deterministic parameter init -------------------------
def init_layer_params(key, node_dim, edge_indim, edge_outdim, rel_hidden, obj_hidden):
    ks = jax.random.split(key, 10)

    def _w(k, shape):
        fan_in = shape[0]
        return jax.random.normal(k, shape, jnp.float32) / jnp.sqrt(jnp.float32(fan_in))

    return {
        # relational model: Linear(2*node_dim + edge_indim -> rel_hidden) split into 3
        "w1a": _w(ks[0], (node_dim, rel_hidden)),
        "w1b": _w(ks[1], (node_dim, rel_hidden)),
        "w1c": _w(ks[2], (edge_indim, rel_hidden)),
        "b1": 0.01 * jax.random.normal(ks[3], (1, rel_hidden), jnp.float32),
        "w2": _w(ks[4], (rel_hidden, edge_outdim)),
        "b2": 0.01 * jax.random.normal(ks[5], (1, edge_outdim), jnp.float32),
        # object model: Linear(node_dim + edge_outdim -> obj_hidden) split into 2
        "v1a": _w(ks[6], (node_dim, obj_hidden)),
        "v1b": _w(ks[7], (edge_outdim, obj_hidden)),
        "c1": 0.01 * jax.random.normal(ks[8], (1, obj_hidden), jnp.float32),
        "v2": _w(ks[9], (obj_hidden, node_dim)),
        "c2": jnp.zeros((1, node_dim), jnp.float32),
    }


if __name__ == "__main__":
    # Small graph: 16 nodes with 8-dim features, 32 edges with 8-dim attrs.
    N, E = 16, 32
    NODE_DIM, EDGE_DIM = 8, 8
    REL_HIDDEN, OBJ_HIDDEN = 16, 16
    N_LAYERS = 2
    ALPHA = 0.5

    root = jax.random.PRNGKey(0)
    kx, ke, ks, kd, kp = jax.random.split(root, 5)

    x = jax.random.normal(kx, (N, NODE_DIM), jnp.float32)
    edge_attr = jax.random.normal(ke, (E, EDGE_DIM), jnp.float32)
    edge_index = jnp.stack([
        jax.random.randint(ks, (E,), 0, N),
        jax.random.randint(kd, (E,), 0, N),
    ], axis=0)  # (2, E)

    layer_keys = jax.random.split(kp, N_LAYERS)
    layer_params = [
        init_layer_params(layer_keys[i], NODE_DIM, EDGE_DIM, EDGE_DIM,
                          REL_HIDDEN, OBJ_HIDDEN)
        for i in range(N_LAYERS)
    ]

    x_out, xs, edge_attrs = resin_forward(x, edge_index, edge_attr, layer_params, ALPHA)
    jax.block_until_ready(x_out)
    jax.block_until_ready(xs)
    jax.block_until_ready(edge_attrs)

    # Sanity check against a pure-JAX f32 reference. The kernel uses native-bf16 MXU
    # operands + bf16 output writeback (f32 accumulation / residual), so tolerances are
    # relaxed relative to the f32 reference.
    x_ref, xs_ref, ea_ref = _reference_forward(x, edge_index, edge_attr, layer_params, ALPHA)
    assert len(xs) == N_LAYERS + 1 and len(edge_attrs) == N_LAYERS + 1
    for a, b in zip(xs, xs_ref):
        assert a.shape == b.shape
        assert jnp.allclose(a, b, atol=1e-1, rtol=1e-1)
    for a, b in zip(edge_attrs, ea_ref):
        assert a.shape == b.shape
        assert jnp.allclose(a, b, atol=1e-1, rtol=1e-1)

    print("KERNEL_OK")
</pallas_src>

<mosaic_0001>
module attributes {stable_mosaic.version = 11 : i64} {
  func.func @_resin_stack_kernel(%arg0: i32, %arg1: memref<16x128xf32, #tpu.memory_space<any>>, %arg2: memref<32x128xf32, #tpu.memory_space<any>>, %arg3: memref<32x16xbf16, #tpu.memory_space<any>>, %arg4: memref<32x16xbf16, #tpu.memory_space<any>>, %arg5: memref<16x32xbf16, #tpu.memory_space<any>>, %arg6: memref<1x384x128xbf16, #tpu.memory_space<vmem>>, %arg7: memref<1x1x128xf32, #tpu.memory_space<vmem>>, %arg8: memref<1x128x128xbf16, #tpu.memory_space<vmem>>, %arg9: memref<1x1x128xf32, #tpu.memory_space<vmem>>, %arg10: memref<1x256x128xbf16, #tpu.memory_space<vmem>>, %arg11: memref<1x1x128xf32, #tpu.memory_space<vmem>>, %arg12: memref<1x128x128xbf16, #tpu.memory_space<vmem>>, %arg13: memref<1x1x128xf32, #tpu.memory_space<vmem>>, %arg14: memref<1x16x128xbf16, #tpu.memory_space<vmem>>, %arg15: memref<1x32x128xbf16, #tpu.memory_space<vmem>>, %arg16: memref<16x128xf32, #tpu.memory_space<vmem>>, %arg17: memref<32x128xf32, #tpu.memory_space<vmem>>, %arg18: memref<32x16xbf16, #tpu.memory_space<vmem>>, %arg19: memref<32x16xbf16, #tpu.memory_space<vmem>>, %arg20: memref<16x32xbf16, #tpu.memory_space<vmem>>, %arg21: memref<5x!tpu.dma_semaphore, #tpu.memory_space<semaphore_mem>>) attributes {dimension_semantics = [#tpu.dimension_semantics<arbitrary>], iteration_bounds = array<i64: 2>, scalar_prefetch = 0 : i64, scratch_operands = 6 : i64, tpu.core_type = #tpu.core_type<tc>, window_params = [{}, {}, {}, {}, {}, {transform_indices = @transform_5, window_bounds = array<i64: 1, 384, 128>}, {transform_indices = @transform_6, window_bounds = array<i64: 1, 1, 128>}, {transform_indices = @transform_7, window_bounds = array<i64: 1, 128, 128>}, {transform_indices = @transform_8, window_bounds = array<i64: 1, 1, 128>}, {transform_indices = @transform_9, window_bounds = array<i64: 1, 256, 128>}, {transform_indices = @transform_10, window_bounds = array<i64: 1, 1, 128>}, {transform_indices = @transform_11, window_bounds = array<i64: 1, 128, 128>}, {transform_indices = @transform_12, window_bounds = array<i64: 1, 1, 128>}, {transform_indices = @transform_13, window_bounds = array<i64: 1, 16, 128>}, {transform_indices = @transform_14, window_bounds = array<i64: 1, 32, 128>}]} {
    %c0_i32 = arith.constant 0 : i32
    %0 = arith.cmpi eq, %arg0, %c0_i32 : i32
    %1 = arith.extui %0 : i1 to i32
    %c0_i32_0 = arith.constant 0 : i32
    %2 = arith.cmpi ne, %1, %c0_i32_0 : i32
    scf.if %2 {
      %c0_i32_65 = arith.constant 0 : i32
      %80 = tpu.memref_slice %arg21[%c0_i32_65] : memref<5x!tpu.dma_semaphore, #tpu.memory_space<semaphore_mem>> -> memref<1x!tpu.dma_semaphore, #tpu.memory_space<semaphore_mem>>
      %81 = tpu.memref_squeeze %80 : memref<1x!tpu.dma_semaphore, #tpu.memory_space<semaphore_mem>> -> memref<!tpu.dma_semaphore, #tpu.memory_space<semaphore_mem>>
      tpu.enqueue_dma source(%arg1 : memref<16x128xf32, #tpu.memory_space<any>>) target(%arg16 : memref<16x128xf32, #tpu.memory_space<vmem>>) target_semaphore(%81 : memref<!tpu.dma_semaphore, #tpu.memory_space<semaphore_mem>>)
      %c1_i32 = arith.constant 1 : i32
      %82 = tpu.memref_slice %arg21[%c1_i32] : memref<5x!tpu.dma_semaphore, #tpu.memory_space<semaphore_mem>> -> memref<1x!tpu.dma_semaphore, #tpu.memory_space<semaphore_mem>>
      %83 = tpu.memref_squeeze %82 : memref<1x!tpu.dma_semaphore, #tpu.memory_space<semaphore_mem>> -> memref<!tpu.dma_semaphore, #tpu.memory_space<semaphore_mem>>
      tpu.enqueue_dma source(%arg2 : memref<32x128xf32, #tpu.memory_space<any>>) target(%arg17 : memref<32x128xf32, #tpu.memory_space<vmem>>) target_semaphore(%83 : memref<!tpu.dma_semaphore, #tpu.memory_space<semaphore_mem>>)
      %c2_i32 = arith.constant 2 : i32
      %84 = tpu.memref_slice %arg21[%c2_i32] : memref<5x!tpu.dma_semaphore, #tpu.memory_space<semaphore_mem>> -> memref<1x!tpu.dma_semaphore, #tpu.memory_space<semaphore_mem>>
      %85 = tpu.memref_squeeze %84 : memref<1x!tpu.dma_semaphore, #tpu.memory_space<semaphore_mem>> -> memref<!tpu.dma_semaphore, #tpu.memory_space<semaphore_mem>>
      tpu.enqueue_dma source(%arg3 : memref<32x16xbf16, #tpu.memory_space<any>>) target(%arg18 : memref<32x16xbf16, #tpu.memory_space<vmem>>) target_semaphore(%85 : memref<!tpu.dma_semaphore, #tpu.memory_space<semaphore_mem>>)
      %c3_i32 = arith.constant 3 : i32
      %86 = tpu.memref_slice %arg21[%c3_i32] : memref<5x!tpu.dma_semaphore, #tpu.memory_space<semaphore_mem>> -> memref<1x!tpu.dma_semaphore, #tpu.memory_space<semaphore_mem>>
      %87 = tpu.memref_squeeze %86 : memref<1x!tpu.dma_semaphore, #tpu.memory_space<semaphore_mem>> -> memref<!tpu.dma_semaphore, #tpu.memory_space<semaphore_mem>>
      tpu.enqueue_dma source(%arg4 : memref<32x16xbf16, #tpu.memory_space<any>>) target(%arg19 : memref<32x16xbf16, #tpu.memory_space<vmem>>) target_semaphore(%87 : memref<!tpu.dma_semaphore, #tpu.memory_space<semaphore_mem>>)
      %c4_i32 = arith.constant 4 : i32
      %88 = tpu.memref_slice %arg21[%c4_i32] : memref<5x!tpu.dma_semaphore, #tpu.memory_space<semaphore_mem>> -> memref<1x!tpu.dma_semaphore, #tpu.memory_space<semaphore_mem>>
      %89 = tpu.memref_squeeze %88 : memref<1x!tpu.dma_semaphore, #tpu.memory_space<semaphore_mem>> -> memref<!tpu.dma_semaphore, #tpu.memory_space<semaphore_mem>>
      tpu.enqueue_dma source(%arg5 : memref<16x32xbf16, #tpu.memory_space<any>>) target(%arg20 : memref<16x32xbf16, #tpu.memory_space<vmem>>) target_semaphore(%89 : memref<!tpu.dma_semaphore, #tpu.memory_space<semaphore_mem>>)
      %c0_i32_66 = arith.constant 0 : i32
      %90 = tpu.memref_slice %arg21[%c0_i32_66] : memref<5x!tpu.dma_semaphore, #tpu.memory_space<semaphore_mem>> -> memref<1x!tpu.dma_semaphore, #tpu.memory_space<semaphore_mem>>
      %91 = tpu.memref_squeeze %90 : memref<1x!tpu.dma_semaphore, #tpu.memory_space<semaphore_mem>> -> memref<!tpu.dma_semaphore, #tpu.memory_space<semaphore_mem>>
      tpu.wait_dma2 semaphore(%91 : memref<!tpu.dma_semaphore, #tpu.memory_space<semaphore_mem>>) src(%arg1 : memref<16x128xf32, #tpu.memory_space<any>>) dst(%arg16 : memref<16x128xf32, #tpu.memory_space<vmem>>)
      %c1_i32_67 = arith.constant 1 : i32
      %92 = tpu.memref_slice %arg21[%c1_i32_67] : memref<5x!tpu.dma_semaphore, #tpu.memory_space<semaphore_mem>> -> memref<1x!tpu.dma_semaphore, #tpu.memory_space<semaphore_mem>>
      %93 = tpu.memref_squeeze %92 : memref<1x!tpu.dma_semaphore, #tpu.memory_space<semaphore_mem>> -> memref<!tpu.dma_semaphore, #tpu.memory_space<semaphore_mem>>
      tpu.wait_dma2 semaphore(%93 : memref<!tpu.dma_semaphore, #tpu.memory_space<semaphore_mem>>) src(%arg2 : memref<32x128xf32, #tpu.memory_space<any>>) dst(%arg17 : memref<32x128xf32, #tpu.memory_space<vmem>>)
      %c2_i32_68 = arith.constant 2 : i32
      %94 = tpu.memref_slice %arg21[%c2_i32_68] : memref<5x!tpu.dma_semaphore, #tpu.memory_space<semaphore_mem>> -> memref<1x!tpu.dma_semaphore, #tpu.memory_space<semaphore_mem>>
      %95 = tpu.memref_squeeze %94 : memref<1x!tpu.dma_semaphore, #tpu.memory_space<semaphore_mem>> -> memref<!tpu.dma_semaphore, #tpu.memory_space<semaphore_mem>>
      tpu.wait_dma2 semaphore(%95 : memref<!tpu.dma_semaphore, #tpu.memory_space<semaphore_mem>>) src(%arg3 : memref<32x16xbf16, #tpu.memory_space<any>>) dst(%arg18 : memref<32x16xbf16, #tpu.memory_space<vmem>>)
      %c3_i32_69 = arith.constant 3 : i32
      %96 = tpu.memref_slice %arg21[%c3_i32_69] : memref<5x!tpu.dma_semaphore, #tpu.memory_space<semaphore_mem>> -> memref<1x!tpu.dma_semaphore, #tpu.memory_space<semaphore_mem>>
      %97 = tpu.memref_squeeze %96 : memref<1x!tpu.dma_semaphore, #tpu.memory_space<semaphore_mem>> -> memref<!tpu.dma_semaphore, #tpu.memory_space<semaphore_mem>>
      tpu.wait_dma2 semaphore(%97 : memref<!tpu.dma_semaphore, #tpu.memory_space<semaphore_mem>>) src(%arg4 : memref<32x16xbf16, #tpu.memory_space<any>>) dst(%arg19 : memref<32x16xbf16, #tpu.memory_space<vmem>>)
      %c4_i32_70 = arith.constant 4 : i32
      %98 = tpu.memref_slice %arg21[%c4_i32_70] : memref<5x!tpu.dma_semaphore, #tpu.memory_space<semaphore_mem>> -> memref<1x!tpu.dma_semaphore, #tpu.memory_space<semaphore_mem>>
      %99 = tpu.memref_squeeze %98 : memref<1x!tpu.dma_semaphore, #tpu.memory_space<semaphore_mem>> -> memref<!tpu.dma_semaphore, #tpu.memory_space<semaphore_mem>>
      tpu.wait_dma2 semaphore(%99 : memref<!tpu.dma_semaphore, #tpu.memory_space<semaphore_mem>>) src(%arg5 : memref<16x32xbf16, #tpu.memory_space<any>>) dst(%arg20 : memref<16x32xbf16, #tpu.memory_space<vmem>>)
    } else {
    }
    %c0 = arith.constant 0 : index
    %c0_1 = arith.constant 0 : index
    %3 = vector.load %arg16[%c0, %c0_1] : memref<16x128xf32, #tpu.memory_space<vmem>>, vector<16x128xf32>
    %c0_2 = arith.constant 0 : index
    %c0_3 = arith.constant 0 : index
    %4 = vector.load %arg17[%c0_2, %c0_3] : memref<32x128xf32, #tpu.memory_space<vmem>>, vector<32x128xf32>
    %5 = arith.truncf %3 : vector<16x128xf32> to vector<16x128xbf16>
    %6 = arith.truncf %4 : vector<32x128xf32> to vector<32x128xbf16>
    %c0_4 = arith.constant 0 : index
    %c0_5 = arith.constant 0 : index
    %7 = vector.load %arg18[%c0_4, %c0_5] : memref<32x16xbf16, #tpu.memory_space<vmem>>, vector<32x16xbf16>
    %cst = arith.constant dense<0.000000e+00> : vector<32x128xf32>
    %8 = tpu.matmul %7, %5, %cst {dimension_numbers = #tpu.dot_dimension_numbers<[1], [0], [0], [1], [0, 0, 1, 1], [], []>} : vector<32x16xbf16>, vector<16x128xbf16>, vector<32x128xf32> -> vector<32x128xf32>
    %c0_6 = arith.constant 0 : index
    %c0_7 = arith.constant 0 : index
    %9 = vector.load %arg19[%c0_6, %c0_7] : memref<32x16xbf16, #tpu.memory_space<vmem>>, vector<32x16xbf16>
    %cst_8 = arith.constant dense<0.000000e+00> : vector<32x128xf32>
    %10 = tpu.matmul %9, %5, %cst_8 {dimension_numbers = #tpu.dot_dimension_numbers<[1], [0], [0], [1], [0, 0, 1, 1], [], []>} : vector<32x16xbf16>, vector<16x128xbf16>, vector<32x128xf32> -> vector<32x128xf32>
    %11 = arith.truncf %10 : vector<32x128xf32> to vector<32x128xbf16>
    %c0_9 = arith.constant 0 : index
    %c0_10 = arith.constant 0 : index
    %c0_11 = arith.constant 0 : index
    %12 = vector.load %arg6[%c0_9, %c0_10, %c0_11] : memref<1x384x128xbf16, #tpu.memory_space<vmem>>, vector<1x128x128xbf16>
    %13 = vector.shape_cast %12 : vector<1x128x128xbf16> to vector<128x128xbf16>
    %cst_12 = arith.constant dense<0.000000e+00> : vector<32x128xf32>
    %14 = tpu.matmul %11, %13, %cst_12 {dimension_numbers = #tpu.dot_dimension_numbers<[1], [0], [0], [1], [0, 0, 1, 1], [], []>} : vector<32x128xbf16>, vector<128x128xbf16>, vector<32x128xf32> -> vector<32x128xf32>
    %15 = arith.truncf %8 : vector<32x128xf32> to vector<32x128xbf16>
    %c0_13 = arith.constant 0 : index
    %c128 = arith.constant 128 : index
    %c0_14 = arith.constant 0 : index
    %16 = vector.load %arg6[%c0_13, %c128, %c0_14] : memref<1x384x128xbf16, #tpu.memory_space<vmem>>, vector<1x128x128xbf16>
    %17 = vector.shape_cast %16 : vector<1x128x128xbf16> to vector<128x128xbf16>
    %cst_15 = arith.constant dense<0.000000e+00> : vector<32x128xf32>
    %18 = tpu.matmul %15, %17, %cst_15 {dimension_numbers = #tpu.dot_dimension_numbers<[1], [0], [0], [1], [0, 0, 1, 1], [], []>} : vector<32x128xbf16>, vector<128x128xbf16>, vector<32x128xf32> -> vector<32x128xf32>
    %19 = arith.addf %14, %18 : vector<32x128xf32>
    %c0_16 = arith.constant 0 : index
    %c256 = arith.constant 256 : index
    %c0_17 = arith.constant 0 : index
    %20 = vector.load %arg6[%c0_16, %c256, %c0_17] : memref<1x384x128xbf16, #tpu.memory_space<vmem>>, vector<1x128x128xbf16>
    %21 = vector.shape_cast %20 : vector<1x128x128xbf16> to vector<128x128xbf16>
    %cst_18 = arith.constant dense<0.000000e+00> : vector<32x128xf32>
    %22 = tpu.matmul %6, %21, %cst_18 {dimension_numbers = #tpu.dot_dimension_numbers<[1], [0], [0], [1], [0, 0, 1, 1], [], []>} : vector<32x128xbf16>, vector<128x128xbf16>, vector<32x128xf32> -> vector<32x128xf32>
    %23 = arith.addf %19, %22 : vector<32x128xf32>
    %c0_19 = arith.constant 0 : index
    %c0_20 = arith.constant 0 : index
    %c0_21 = arith.constant 0 : index
    %24 = vector.load %arg7[%c0_19, %c0_20, %c0_21] : memref<1x1x128xf32, #tpu.memory_space<vmem>>, vector<1x1x128xf32>
    %25 = vector.shape_cast %24 : vector<1x1x128xf32> to vector<1x128xf32>
    %26 = vector.broadcast %25 : vector<1x128xf32> to vector<32x128xf32>
    %27 = arith.addf %23, %26 : vector<32x128xf32>
    %cst_22 = arith.constant 0.000000e+00 : f32
    %28 = vector.broadcast %cst_22 : f32 to vector<32x128xf32>
    %29 = arith.maximumf %27, %28 : vector<32x128xf32>
    %30 = arith.truncf %29 : vector<32x128xf32> to vector<32x128xbf16>
    %c0_23 = arith.constant 0 : index
    %c0_24 = arith.constant 0 : index
    %c0_25 = arith.constant 0 : index
    %31 = vector.load %arg8[%c0_23, %c0_24, %c0_25] : memref<1x128x128xbf16, #tpu.memory_space<vmem>>, vector<1x128x128xbf16>
    %32 = vector.shape_cast %31 : vector<1x128x128xbf16> to vector<128x128xbf16>
    %cst_26 = arith.constant dense<0.000000e+00> : vector<32x128xf32>
    %33 = tpu.matmul %30, %32, %cst_26 {dimension_numbers = #tpu.dot_dimension_numbers<[1], [0], [0], [1], [0, 0, 1, 1], [], []>} : vector<32x128xbf16>, vector<128x128xbf16>, vector<32x128xf32> -> vector<32x128xf32>
    %c0_27 = arith.constant 0 : index
    %c0_28 = arith.constant 0 : index
    %c0_29 = arith.constant 0 : index
    %34 = vector.load %arg9[%c0_27, %c0_28, %c0_29] : memref<1x1x128xf32, #tpu.memory_space<vmem>>, vector<1x1x128xf32>
    %35 = vector.shape_cast %34 : vector<1x1x128xf32> to vector<1x128xf32>
    %36 = vector.broadcast %35 : vector<1x128xf32> to vector<32x128xf32>
    %37 = arith.addf %33, %36 : vector<32x128xf32>
    %c0_30 = arith.constant 0 : index
    %c0_31 = arith.constant 0 : index
    %38 = vector.load %arg20[%c0_30, %c0_31] : memref<16x32xbf16, #tpu.memory_space<vmem>>, vector<16x32xbf16>
    %39 = arith.truncf %37 : vector<32x128xf32> to vector<32x128xbf16>
    %cst_32 = arith.constant dense<0.000000e+00> : vector<16x128xf32>
    %40 = tpu.matmul %38, %39, %cst_32 {dimension_numbers = #tpu.dot_dimension_numbers<[1], [0], [0], [1], [0, 0, 1, 1], [], []>} : vector<16x32xbf16>, vector<32x128xbf16>, vector<16x128xf32> -> vector<16x128xf32>
    %c0_33 = arith.constant 0 : index
    %c0_34 = arith.constant 0 : index
    %c0_35 = arith.constant 0 : index
    %41 = vector.load %arg10[%c0_33, %c0_34, %c0_35] : memref<1x256x128xbf16, #tpu.memory_space<vmem>>, vector<1x128x128xbf16>
    %42 = vector.shape_cast %41 : vector<1x128x128xbf16> to vector<128x128xbf16>
    %cst_36 = arith.constant dense<0.000000e+00> : vector<16x128xf32>
    %43 = tpu.matmul %5, %42, %cst_36 {dimension_numbers = #tpu.dot_dimension_numbers<[1], [0], [0], [1], [0, 0, 1, 1], [], []>} : vector<16x128xbf16>, vector<128x128xbf16>, vector<16x128xf32> -> vector<16x128xf32>
    %44 = arith.truncf %40 : vector<16x128xf32> to vector<16x128xbf16>
    %c0_37 = arith.constant 0 : index
    %c128_38 = arith.constant 128 : index
    %c0_39 = arith.constant 0 : index
    %45 = vector.load %arg10[%c0_37, %c128_38, %c0_39] : memref<1x256x128xbf16, #tpu.memory_space<vmem>>, vector<1x128x128xbf16>
    %46 = vector.shape_cast %45 : vector<1x128x128xbf16> to vector<128x128xbf16>
    %cst_40 = arith.constant dense<0.000000e+00> : vector<16x128xf32>
    %47 = tpu.matmul %44, %46, %cst_40 {dimension_numbers = #tpu.dot_dimension_numbers<[1], [0], [0], [1], [0, 0, 1, 1], [], []>} : vector<16x128xbf16>, vector<128x128xbf16>, vector<16x128xf32> -> vector<16x128xf32>
    %48 = arith.addf %43, %47 : vector<16x128xf32>
    %c0_41 = arith.constant 0 : index
    %c0_42 = arith.constant 0 : index
    %c0_43 = arith.constant 0 : index
    %49 = vector.load %arg11[%c0_41, %c0_42, %c0_43] : memref<1x1x128xf32, #tpu.memory_space<vmem>>, vector<1x1x128xf32>
    %50 = vector.shape_cast %49 : vector<1x1x128xf32> to vector<1x128xf32>
    %51 = vector.broadcast %50 : vector<1x128xf32> to vector<16x128xf32>
    %52 = arith.addf %48, %51 : vector<16x128xf32>
    %cst_44 = arith.constant 0.000000e+00 : f32
    %53 = vector.broadcast %cst_44 : f32 to vector<16x128xf32>
    %54 = arith.maximumf %52, %53 : vector<16x128xf32>
    %55 = arith.truncf %54 : vector<16x128xf32> to vector<16x128xbf16>
    %c0_45 = arith.constant 0 : index
    %c0_46 = arith.constant 0 : index
    %c0_47 = arith.constant 0 : index
    %56 = vector.load %arg12[%c0_45, %c0_46, %c0_47] : memref<1x128x128xbf16, #tpu.memory_space<vmem>>, vector<1x128x128xbf16>
    %57 = vector.shape_cast %56 : vector<1x128x128xbf16> to vector<128x128xbf16>
    %cst_48 = arith.constant dense<0.000000e+00> : vector<16x128xf32>
    %58 = tpu.matmul %55, %57, %cst_48 {dimension_numbers = #tpu.dot_dimension_numbers<[1], [0], [0], [1], [0, 0, 1, 1], [], []>} : vector<16x128xbf16>, vector<128x128xbf16>, vector<16x128xf32> -> vector<16x128xf32>
    %c0_49 = arith.constant 0 : index
    %c0_50 = arith.constant 0 : index
    %c0_51 = arith.constant 0 : index
    %59 = vector.load %arg13[%c0_49, %c0_50, %c0_51] : memref<1x1x128xf32, #tpu.memory_space<vmem>>, vector<1x1x128xf32>
    %60 = vector.shape_cast %59 : vector<1x1x128xf32> to vector<1x128xf32>
    %61 = vector.broadcast %60 : vector<1x128xf32> to vector<16x128xf32>
    %62 = arith.addf %58, %61 : vector<16x128xf32>
    %cst_52 = arith.constant 5.000000e-01 : f32
    %63 = vector.broadcast %cst_52 : f32 to vector<16x128xf32>
    %64 = arith.mulf %63, %3 : vector<16x128xf32>
    %cst_53 = arith.constant 0.000000e+00 : f32
    %65 = vector.broadcast %cst_53 : f32 to vector<16x128xf32>
    %66 = arith.maximumf %62, %65 : vector<16x128xf32>
    %cst_54 = arith.constant 5.000000e-01 : f32
    %67 = vector.broadcast %cst_54 : f32 to vector<16x128xf32>
    %68 = arith.mulf %67, %66 : vector<16x128xf32>
    %69 = arith.addf %64, %68 : vector<16x128xf32>
    %c0_55 = arith.constant 0 : index
    %c0_56 = arith.constant 0 : index
    %70 = vector.load %arg16[%c0_55, %c0_56] : memref<16x128xf32, #tpu.memory_space<vmem>>, vector<16x128xf32>
    tpu.vector_store %arg16[%c0_55, %c0_56], %69 {strides = array<i32>} : memref<16x128xf32, #tpu.memory_space<vmem>>, vector<16x128xf32>,
    %c0_57 = arith.constant 0 : index
    %c0_58 = arith.constant 0 : index
    %71 = vector.load %arg17[%c0_57, %c0_58] : memref<32x128xf32, #tpu.memory_space<vmem>>, vector<32x128xf32>
    tpu.vector_store %arg17[%c0_57, %c0_58], %37 {strides = array<i32>} : memref<32x128xf32, #tpu.memory_space<vmem>>, vector<32x128xf32>,
    %72 = arith.truncf %69 : vector<16x128xf32> to vector<16x128xbf16>
    %c0_59 = arith.constant 0 : index
    %c0_60 = arith.constant 0 : index
    %c0_61 = arith.constant 0 : index
    %73 = vector.load %arg14[%c0_59, %c0_60, %c0_61] : memref<1x16x128xbf16, #tpu.memory_space<vmem>>, vector<1x16x128xbf16>
    %74 = vector.shape_cast %73 : vector<1x16x128xbf16> to vector<16x128xbf16>
    %75 = vector.shape_cast %72 : vector<16x128xbf16> to vector<1x16x128xbf16>
    tpu.vector_store %arg14[%c0_59, %c0_60, %c0_61], %75 {strides = array<i32>} : memref<1x16x128xbf16, #tpu.memory_space<vmem>>, vector<1x16x128xbf16>,
    %76 = arith.truncf %37 : vector<32x128xf32> to vector<32x128xbf16>
    %c0_62 = arith.constant 0 : index
    %c0_63 = arith.constant 0 : index
    %c0_64 = arith.constant 0 : index
    %77 = vector.load %arg15[%c0_62, %c0_63, %c0_64] : memref<1x32x128xbf16, #tpu.memory_space<vmem>>, vector<1x32x128xbf16>
    %78 = vector.shape_cast %77 : vector<1x32x128xbf16> to vector<32x128xbf16>
    %79 = vector.shape_cast %76 : vector<32x128xbf16> to vector<1x32x128xbf16>
    tpu.vector_store %arg15[%c0_62, %c0_63, %c0_64], %79 {strides = array<i32>} : memref<1x32x128xbf16, #tpu.memory_space<vmem>>, vector<1x32x128xbf16>,
    return
  }
  func.func @transform_5(%arg0: i32) -> (i32, i32, i32) {
    %c0_i32 = arith.constant 0 : i32
    %c0_i32_0 = arith.constant 0 : i32
    %c0_i32_1 = arith.constant 0 : i32
    return %arg0, %c0_i32, %c0_i32_0 : i32, i32, i32
  }
  func.func @transform_6(%arg0: i32) -> (i32, i32, i32) {
    %c0_i32 = arith.constant 0 : i32
    %c0_i32_0 = arith.constant 0 : i32
    %c0_i32_1 = arith.constant 0 : i32
    return %arg0, %c0_i32, %c0_i32_0 : i32, i32, i32
  }
  func.func @transform_7(%arg0: i32) -> (i32, i32, i32) {
    %c0_i32 = arith.constant 0 : i32
    %c0_i32_0 = arith.constant 0 : i32
    %c0_i32_1 = arith.constant 0 : i32
    return %arg0, %c0_i32, %c0_i32_0 : i32, i32, i32
  }
  func.func @transform_8(%arg0: i32) -> (i32, i32, i32) {
    %c0_i32 = arith.constant 0 : i32
    %c0_i32_0 = arith.constant 0 : i32
    %c0_i32_1 = arith.constant 0 : i32
    return %arg0, %c0_i32, %c0_i32_0 : i32, i32, i32
  }
  func.func @transform_9(%arg0: i32) -> (i32, i32, i32) {
    %c0_i32 = arith.constant 0 : i32
    %c0_i32_0 = arith.constant 0 : i32
    %c0_i32_1 = arith.constant 0 : i32
    return %arg0, %c0_i32, %c0_i32_0 : i32, i32, i32
  }
  func.func @transform_10(%arg0: i32) -> (i32, i32, i32) {
    %c0_i32 = arith.constant 0 : i32
    %c0_i32_0 = arith.constant 0 : i32
    %c0_i32_1 = arith.constant 0 : i32
    return %arg0, %c0_i32, %c0_i32_0 : i32, i32, i32
  }
  func.func @transform_11(%arg0: i32) -> (i32, i32, i32) {
    %c0_i32 = arith.constant 0 : i32
    %c0_i32_0 = arith.constant 0 : i32
    %c0_i32_1 = arith.constant 0 : i32
    return %arg0, %c0_i32, %c0_i32_0 : i32, i32, i32
  }
  func.func @transform_12(%arg0: i32) -> (i32, i32, i32) {
    %c0_i32 = arith.constant 0 : i32
    %c0_i32_0 = arith.constant 0 : i32
    %c0_i32_1 = arith.constant 0 : i32
    return %arg0, %c0_i32, %c0_i32_0 : i32, i32, i32
  }
  func.func @transform_13(%arg0: i32) -> (i32, i32, i32) {
    %c0_i32 = arith.constant 0 : i32
    %c0_i32_0 = arith.constant 0 : i32
    %c0_i32_1 = arith.constant 0 : i32
    return %arg0, %c0_i32, %c0_i32_0 : i32, i32, i32
  }
  func.func @transform_14(%arg0: i32) -> (i32, i32, i32) {
    %c0_i32 = arith.constant 0 : i32
    %c0_i32_0 = arith.constant 0 : i32
    %c0_i32_1 = arith.constant 0 : i32
    return %arg0, %c0_i32, %c0_i32_0 : i32, i32, i32
  }
}

</mosaic_0001>

<bundles_post_ra>
// kernel: tpu_custom_call.1
= control target key start
LH: loop header
LB: loop body
LE: loop exit
PB: predicated region body
PF: predicated region fallthrough
CT: control target
= control target key end

     0   :  { %s3497_s0 = inlined_call_operand.vmem [shape: f32[16,128], index: 0, kind: input, shape index: {}]   ;;  %s3498_s1 = inlined_call_operand.vmem [shape: f32[32,128], index: 1, kind: input, shape index: {}]   ;;  %s3499_s2 = inlined_call_operand.vmem [shape: bf16[32,16], index: 2, kind: input, shape index: {}]   ;;  %s3500_s3 = inlined_call_operand.vmem [shape: bf16[32,16], index: 3, kind: input, shape index: {}]   ;;  %s3501_s4 = inlined_call_operand.hbm [shape: bf16[16,32], index: 4, kind: input, shape index: {}]   ;;  %s3502_s5 = inlined_call_operand.hbm [shape: bf16[2,384,128], index: 5, kind: input, shape index: {}]   ;;  %s3503_s6 = inlined_call_operand.vmem [shape: f32[2,1,128], index: 6, kind: input, shape index: {}]   ;;  %s3504_s7 = inlined_call_operand.hbm [shape: bf16[2,128,128], index: 7, kind: input, shape index: {}]   ;;  %s3505_s8 = inlined_call_operand.vmem [shape: f32[2,1,128], index: 8, kind: input, shape index: {}]   ;;  %s3506_s9 = inlined_call_operand.hbm [shape: bf16[2,256,128], index: 9, kind: input, shape index: {}]   ;;  %s3507_s10 = inlined_call_operand.vmem [shape: f32[2,1,128], index: 10, kind: input, shape index: {}]   ;;  %s3508_s11 = inlined_call_operand.hbm [shape: bf16[2,128,128], index: 11, kind: input, shape index: {}]   ;;  %s3509_s12 = inlined_call_operand.vmem [shape: f32[2,1,128], index: 12, kind: input, shape index: {}]   ;;  %s3510_s13 = inlined_call_operand.hbm [shape: bf16[2,16,128], index: 13, kind: output, shape index: {0}]   ;;  %s3511_s14 = inlined_call_operand.hbm [shape: bf16[2,32,128], index: 14, kind: output, shape index: {1}]  }
   0x1   :  { %3531 = sst [smem:[#allocation43_spill]] %s3499_s2 }
   0x2   :  { %3532 = sst [smem:[#allocation44_spill]] %s3500_s3 }
   0x3   :  { %3533 = sst [smem:[#allocation45_spill]] %s3501_s4 }
   0x4   :  { %3534 = sst [smem:[#allocation46_spill]] %s3502_s5 }
   0x5   :  { %3535 = sst [smem:[#allocation47_spill]] %s3504_s7 }
   0x6   :  { %3536 = sst [smem:[#allocation48_spill]] %s3506_s9 }
   0x7   :  { %3537 = sst [smem:[#allocation49_spill]] %s3508_s11 }
   0x8   :  { %3538 = sst [smem:[#allocation50_spill]] %s3510_s13 }
   0x9   :  { %3539 = sst [smem:[#allocation51_spill]] %s3511_s14 }
   0xa   :  { %20 = vsyncpa [#allocation9], 0 }
   0xb   :  { %22 = vsyncpa [#allocation9 + $0x1], 0 }
   0xc   :  { %23 = vsyncpa [#allocation12], 0 }
   0xd   :  { %25 = vsyncpa [#allocation12 + $0x1], 0 }
   0xe   :  { %26 = vsyncpa [#allocation15], 0 }
   0xf   :  { %28 = vsyncpa [#allocation15 + $0x1], 0 }
  0x10   :  { %29 = vsyncpa [#allocation10], 0 }
  0x11   :  { %31 = vsyncpa [#allocation10 + $0x1], 0 }
  0x12   :  { %32 = vsyncpa [#allocation18], 0 }
  0x13   :  { %34 = vsyncpa [#allocation18 + $0x1], 0  ;;  %s2974_s29 = smov 0   ;;  %s2976_s30 = smov 0  }
  0x14   :  { %s2978_s15 = smov 0   ;;  %s2980_s16 = smov 0  }
  0x15 LB: > { %3540 = sst [smem:[#allocation37_spill]] %s2872_s29  ;;  %s2995_s17 = sadd.s32 4294967295, %s2884_s16   ;;  %s2884_s16 = sphi %s2980_s16, %s3576_s16   ;;  %s2880_s15 = sphi %s2978_s15, %s3578_s15   ;;  %s2876_s30 = sphi %s2976_s30, %s3580_s30   ;;  %s2872_s29 = sphi %s2974_s29, %s3579_s29  }
  0x16   : > { %3541 = sst [smem:[#allocation38_spill]] %s2880_s15  ;;  %s2131_s18 = sadd.s32 4294967294, %s2884_s16  }
  0x17   : > { %s2999_s19 = sadd.s32 1, %s2884_s16   ;;  %s47_s20 = sadd.s32 1, %s2880_s15 }
  0x18   : > { %3542 = sst [smem:[#allocation39_spill]] %s2999_s19  ;;  %s44_s21 = ssub.s32 %s2884_s16, %s2999_s19 }
  0x19   : > { %p54_p0 = scmp.ne.s32.totalorder %s2880_s15, %s2876_s30  ;;  %p45_p1 = scmp.eq.s32.totalorder %s44_s21, 0 }
  0x1a   : > { %p55_p2 = scmp.eq.s32.totalorder %s2884_s16, 0  ;;  %p60_p3 = scmp.ne.s32.totalorder %s2876_s30, %s2872_s29 }
  0x1b   : > { %p61_p4 = scmp.eq.s32.totalorder %s2995_s17, 0  ;;  %p266_p7 = scmp.eq.s32.totalorder %s2995_s17, 1 }
  0x1c   : > { %s3011_s22 = scalar_select %p45_p1, %s2880_s15, %s47_s20  }
  0x1d   : > { %p56_p5 = por %p55_p2, %p54_p0  ;;  %p3013_p6 = por %p61_p4, %p60_p3 }
  0x1e   : > { %3543 = sst [smem:[#allocation40_spill]] %s3011_s22  ;;  %p272_p8 = scmp.eq.s32.totalorder %s2131_s18, 1 }
  0x1f   : > { %s3544_s23 = scalar_select %p3013_p6, 1, 0 }
  0x20   : > { %p2538_p10 = scmp.lt.s32.totalorder %s2884_s16, 2  ;;  %p3020_p11 = por %p266_p7, %p54_p0 }
  0x21   : > { %p3024_p12 = por %p272_p8, %p60_p3  ;;  %s3029_s26 = sand.u32 1, %s2880_s15  }
  0x22   : > { %s3545_s24 = scalar_select %p3020_p11, 1, 0 }
  0x23   : > { %s3547_s25 = scalar_select %p3024_p12, 1, 0 }
  0x24   : > { %3546 = sst [smem:[#allocation41_spill]] %s3545_s24  ;;  %p3031_p13 = pnand %p2538_p10, %p56_p5 }
  0x25   : > { %3548 = sst [smem:[#allocation42_spill]] %s3547_s25  ;;  %s345_s28 = sand.u32 1, %s2884_s16  }
  0x26   : > { %s3519_s18 = sshll.u32 %s3029_s26, 6  ;;  %s3520_s20 = sshll.u32 %s2884_s16, 10 }
  0x27   : > { %s3550_s7 = sld [smem:[#allocation47_spill]]  ;;  %s349_s15 = scalar_lea.vmem [#allocation11], %s3519_s18 }
  0x28   : > { %s356_s25 = sshll.u32 %s349_s15, 4  ;;  %s3050_s29 = scalar_lea.sflag [#allocation12], %s345_s28  ;;  %s3047_s25 = int_to_ptr.vmem [resolvable:$true] %s356_s25 }
  0x29   : > { %p3056_p2 = pneg %p3031_p13 }
  0x2d   : > { %s3043_s19 = scalar_lea.hbm %s3550_s7, %s3520_s20  ;;  %s2645_s15 = scalar_lea.hbm %s3550_s7, 2048 }
  0x2e   : > { %s2640_s13 = scalar_lea.hbm %s3043_s19, 1024  ;;  %p2646_p5 = scmp.lt.s32.totalorder %s3043_s19, %s3550_s7 }
  0x2f   : > { %p2641_p1 = scmp.ne.s32.totalorder %s3043_s19, %s2640_s13  ;;  %p2647_p7 = scmp.lt.s32.totalorder %s2645_s15, %s2640_s13 }
  0x31   : > { %p2643_p3 = pnand %p3056_p2, %p2641_p1  ;;  %p2648_p8 = por %p2647_p7, %p2646_p5 }
  0x33   : > { %p2644_p4 = pneg %p2643_p3 }
  0x35   : > { %p2649_p10 = pnand %p2648_p8, %p2644_p4 }
  0x37   : > { %2652 = shalt.err (!%p2649_p10)
}
  0x38   : > { %s2653_s28 = scalar_lea.vmem %s3047_s25, 1024  ;;  %s2886_s24 = smov [#allocation11]  }
  0x39   : > { %p2654_p9 = scmp.ne.s32.totalorder %s3047_s25, %s2653_s28  ;;  %s2658_s22 = sshll.u32 %s2886_s24, 4  ;;  %s2659_s22 = int_to_ptr.vmem [resolvable:$false] %s2658_s22 }
  0x3a   : > { %s2660_s21 = scalar_lea.vmem %s2659_s22, 2048  ;;  %p2661_p0 = scmp.lt.s32.totalorder %s3047_s25, %s2659_s22 }
  0x3b   : > { %p2656_p1 = pnand %p2654_p9, %p3056_p2  ;;  %p2662_p12 = scmp.lt.s32.totalorder %s2660_s21, %s2653_s28 }
  0x3d   : > { %p2657_p3 = pneg %p2656_p1  ;;  %p2663_p11 = por %p2662_p12, %p2661_p0 }
  0x3f   : > { %p2664_p6 = pnand %p2663_p11, %p2657_p3 }
  0x41   : > { %2667 = shalt.err (!%p2664_p6)
}
  0x42   : > { %s3526_s13 = smov 64   ;;  %s3528_s24 = smov 4  }
  0x43   : > { %2524 = dma.hbm_to_vmem [thread:$0]  (!%p3031_p13), %s3043_s19, 1024, %s3047_s25, %s3050_s29, %s3526_s13, %s3526_s13, %s3528_s24  }
  0x44   : > { %p424_p6 = scmp.lt.s32.totalorder %s2884_s16, 3  ;;  %s2503_s18 = smul.u32 192, %s3029_s26 }
  0x45   : > { %p3552_p9 = scmp.ge.s32.totalorder %s2884_s16, 1  ;;  %s2504_s28 = smul.u32 3072, %s2884_s16 }
  0x46   : > { %s3554_s5 = sld [smem:[#allocation46_spill]]  ;;  %s322_s4 = scalar_lea.vmem [#allocation8], %s2503_s18 }
  0x47   : > { %p3087_p11 = pnand %p3552_p9, %p424_p6  ;;  %s329_s3 = sshll.u32 %s322_s4, 4  ;;  %s3097_s3 = int_to_ptr.vmem [resolvable:$true] %s329_s3 }
  0x48   : > { %s2241_s19 = sshll.u32 %s2884_s16, 11  ;;  %s319_s25 = scalar_lea.sflag [#allocation9], %s3029_s26 }
  0x49   : > { %s3553_s15 = scalar_select %p3087_p11, 1, 0 }
  0x4c   : > { %s3095_s7 = scalar_lea.hbm %s3554_s5, %s2504_s28  ;;  %s2673_s22 = scalar_lea.hbm %s3554_s5, 6144 }
  0x4d   : > { %s2668_s20 = scalar_lea.hbm %s3095_s7, 3072  ;;  %p2674_p5 = scmp.lt.s32.totalorder %s3095_s7, %s3554_s5 }
  0x4e   : > { %p2669_p12 = scmp.ne.s32.totalorder %s3095_s7, %s2668_s20  ;;  %p2675_p7 = scmp.lt.s32.totalorder %s2673_s22, %s2668_s20 }
  0x50   : > { %p2671_p0 = pnand %p2669_p12, %p3056_p2  ;;  %p2676_p8 = por %p2675_p7, %p2674_p5 }
  0x52   : > { %p2672_p4 = pneg %p2671_p0 }
  0x54   : > { %p2677_p10 = pnand %p2676_p8, %p2672_p4 }
  0x56   : > { %2680 = shalt.err (!%p2677_p10)
}
  0x57   : > { %s2681_s4 = scalar_lea.vmem %s3097_s3, 3072  ;;  %s2889_s18 = smov [#allocation8]  }
  0x58   : > { %p2682_p1 = scmp.ne.s32.totalorder %s3097_s3, %s2681_s4  ;;  %s2686_s13 = sshll.u32 %s2889_s18, 4  ;;  %s2687_s13 = int_to_ptr.vmem [resolvable:$false] %s2686_s13 }
  0x59   : > { %s2688_s24 = scalar_lea.vmem %s2687_s13, 6144  ;;  %p2689_p9 = scmp.lt.s32.totalorder %s3097_s3, %s2687_s13 }
  0x5a   : > { %p2684_p3 = pnand %p2682_p1, %p3056_p2  ;;  %p2690_p12 = scmp.lt.s32.totalorder %s2688_s24, %s2681_s4 }
  0x5c   : > { %p2685_p6 = pneg %p2684_p3  ;;  %p2691_p0 = por %p2690_p12, %p2689_p9 }
  0x5e   : > { %p2692_p11 = pnand %p2691_p0, %p2685_p6 }
  0x60   : > { %2695 = shalt.err (!%p2692_p11)
}
  0x61   : > { %s3555_s20 = smov 4   ;;  %s3556_s22 = smov 64  }
  0x62   : > { %2521 = dma.hbm_to_vmem [thread:$0]  (!%p3031_p13), %s3095_s7, 3072, %s3097_s3, %s319_s25, %s3556_s22, %s3556_s22, %s3555_s20  }
  0x63   : > { %s3557_s9 = sld [smem:[#allocation48_spill]]  ;;  %s3558_s4 = sshll.u32 %s3029_s26, 7 }
  0x64   : > { %s376_s13 = scalar_lea.vmem [#allocation13], %s3558_s4 }
  0x65   : > { %s383_s24 = sshll.u32 %s376_s13, 4  ;;  %s384_s24 = int_to_ptr.vmem [resolvable:$true] %s383_s24 }
  0x69   : > { %s3129_s18 = scalar_lea.hbm %s3557_s9, %s2241_s19  ;;  %s2701_s7 = scalar_lea.hbm %s3557_s9, 4096 }
  0x6a   : > { %s2696_s5 = scalar_lea.hbm %s3129_s18, 2048  ;;  %p2702_p7 = scmp.lt.s32.totalorder %s3129_s18, %s3557_s9 }
  0x6b   : > { %p2697_p11 = scmp.ne.s32.totalorder %s3129_s18, %s2696_s5  ;;  %p2703_p8 = scmp.lt.s32.totalorder %s2701_s7, %s2696_s5 }
  0x6d   : > { %p2699_p4 = pnand %p2697_p11, %p3056_p2  ;;  %p2704_p10 = por %p2703_p8, %p2702_p7 }
  0x6f   : > { %p2700_p5 = pneg %p2699_p4 }
  0x71   : > { %p2705_p1 = pnand %p2704_p10, %p2700_p5 }
  0x73   : > { %2708 = shalt.err (!%p2705_p1)
}
  0x74   : > { %s2709_s19 = scalar_lea.vmem %s384_s24, 2048  ;;  %s2890_s21 = smov [#allocation13]  }
  0x75   : > { %p2710_p3 = scmp.ne.s32.totalorder %s384_s24, %s2709_s19  ;;  %s2714_s4 = sshll.u32 %s2890_s21, 4  ;;  %s2715_s4 = int_to_ptr.vmem [resolvable:$false] %s2714_s4 }
  0x76   : > { %s2716_s13 = scalar_lea.vmem %s2715_s4, 4096  ;;  %p2717_p12 = scmp.lt.s32.totalorder %s384_s24, %s2715_s4 }
  0x77   : > { %p2712_p6 = pnand %p2710_p3, %p3056_p2  ;;  %p2718_p0 = scmp.lt.s32.totalorder %s2716_s13, %s2709_s19 }
  0x79   : > { %p2713_p9 = pneg %p2712_p6  ;;  %p2719_p11 = por %p2718_p0, %p2717_p12 }
  0x7b   : > { %p2720_p4 = pnand %p2719_p11, %p2713_p9 }
  0x7d   : > { %2723 = shalt.err (!%p2720_p4)
}
  0x7e   : > { %2527 = dma.hbm_to_vmem [thread:$0]  (!%p3031_p13), %s3129_s18, 2048, %s384_s24, %s3050_s29, %s3556_s22, %s3556_s22, %s3555_s20  }
  0x7f   : > { %s3559_s2 = sshll.u32 %s2884_s16, 10  ;;  %s3560_s11 = sld [smem:[#allocation49_spill]] }
  0x80   : > { %s3561_s25 = sshll.u32 %s3029_s26, 6  ;;  %s400_s21 = scalar_lea.sflag [#allocation15], %s3029_s26 }
  0x81   : > { %s403_s28 = scalar_lea.vmem [#allocation14], %s3561_s25 }
  0x82   : > { %s410_s19 = sshll.u32 %s403_s28, 4  ;;  %s3162_s19 = int_to_ptr.vmem [resolvable:$true] %s410_s19 }
  0x85   : > { %s3158_s7 = scalar_lea.hbm %s3560_s11, %s3559_s2  ;;  %s2729_s24 = scalar_lea.hbm %s3560_s11, 2048 }
  0x86   : > { %s2724_s4 = scalar_lea.hbm %s3158_s7, 1024  ;;  %p2730_p10 = scmp.lt.s32.totalorder %s3158_s7, %s3560_s11 }
  0x87   : > { %p2725_p5 = scmp.ne.s32.totalorder %s3158_s7, %s2724_s4  ;;  %p2731_p1 = scmp.lt.s32.totalorder %s2729_s24, %s2724_s4 }
  0x89   : > { %p2727_p7 = pnand %p2725_p5, %p3056_p2  ;;  %p2732_p3 = por %p2731_p1, %p2730_p10 }
  0x8b   : > { %p2728_p8 = pneg %p2727_p7 }
  0x8d   : > { %p2733_p6 = pnand %p2732_p3, %p2728_p8 }
  0x8f   : > { %2736 = shalt.err (!%p2733_p6)
}
  0x90   : > { %s2737_s26 = scalar_lea.vmem %s3162_s19, 1024  ;;  %s2891_s5 = smov [#allocation14]  }
  0x91   : > { %p2738_p9 = scmp.ne.s32.totalorder %s3162_s19, %s2737_s26  ;;  %s2742_s3 = sshll.u32 %s2891_s5, 4  ;;  %s2743_s3 = int_to_ptr.vmem [resolvable:$false] %s2742_s3 }
  0x92   : > { %s2744_s25 = scalar_lea.vmem %s2743_s3, 2048  ;;  %p2745_p11 = scmp.lt.s32.totalorder %s3162_s19, %s2743_s3 }
  0x93   : > { %p2740_p12 = pnand %p2738_p9, %p3056_p2  ;;  %p2746_p4 = scmp.lt.s32.totalorder %s2744_s25, %s2737_s26 }
  0x95   : > { %p2741_p0 = pneg %p2740_p12  ;;  %p2747_p5 = por %p2746_p4, %p2745_p11 }
  0x97   : > { %p2748_p7 = pnand %p2747_p5, %p2741_p0 }
  0x99   : > { %2751 = shalt.err (!%p2748_p7)
}
  0x9a   : > { %2530 = dma.hbm_to_vmem [thread:$0]  (!%p3031_p13), %s3158_s7, 1024, %s3162_s19, %s400_s21, %s3556_s22, %s3556_s22, %s3555_s20  }
  0x9b   : > { %p3562_p2 = scmp.ne.s32.totalorder %s3553_s15, 0 }
  0x9c   : > { %s3191_s14 = sand.u32 (!%p3562_p2), 1, %s2876_s30   ;;  %p3563_p8 = scmp.ne.s32.totalorder (!%p3562_p2), %s3544_s23, 0 }
  0x9d   : > { %428 = sbr.rel (%p3562_p2) target bundleno = 1507 (0x5e3), region = 52  ;;  %s431_s4 = scalar_lea.sflag (!%p3562_p2), [#allocation9], %s3191_s14 }
  0x9e   : > { %s2505_s28 = smul.u32 (!%p3562_p2), 192, %s3191_s14 }
  0xa0   : > { %s3195_s29 = scalar_lea.vmem (!%p3562_p2), [#allocation8], %s2505_s28 }
  0xa2   : > { %2841 = dma.done.wait (%p3563_p8), %s431_s4, 3072  }
  0xa3   : > { %2843 = vsyncadd (%p3563_p8), %s431_s4, 4294964224  ;;  %s439_s27 = sand.u32 1, %s2995_s17   ;;  %s2145_s15 = sshll.u32 %s3191_s14, 6 }
  0xa4   : > { %s440_s20 = scalar_lea.sflag [#allocation12], %s439_s27  ;;  %s3203_s22 = scalar_lea.vmem [#allocation11], %s2145_s15 }
  0xa5   : > { %2845 = dma.done.wait (%p3563_p8), %s440_s20, 3072  }
  0xa6   : > { %2847 = vsyncadd (%p3563_p8), %s440_s20, 4294964224  ;;  %s2146_s7 = sshll.u32 %s3191_s14, 7  ;;  %s458_s21 = scalar_lea.sflag [#allocation15], %s3191_s14 }
  0xa7   : > { %s3210_s19 = scalar_lea.vmem [#allocation13], %s2146_s7  ;;  %s3213_s18 = scalar_lea.vmem [#allocation14], %s2145_s15 }
  0xa8   : > { %2849 = dma.done.wait (%p3563_p8), %s458_s21, 1024  }
  0xa9   : > { %2851 = vsyncadd (%p3563_p8), %s458_s21, 4294966272  ;;  %s2148_s24 = sshll.u32 %s3191_s14, 3  ;;  %s2149_s13 = sshll.u32 %s3191_s14, 4 }
  0xaa   : > { %p528_p13 = scmp.lt.s32.totalorder %s2995_s17, 1  ;;  %s3241_s9 = scalar_lea.vmem [#allocation16], %s2148_s24 }
  0xab   : > { %s3243_s11 = scalar_lea.vmem [#allocation17], %s2149_s13  ;;  %p2150_p10 = scmp.ne.s32.totalorder %s2995_s17, 0 }
  0xac   : > { %s3223_s2 = scalar_select %p528_p13, %s2995_s17, 1 }
  0xad   : > { %544 = sbr.rel (%p2150_p10) target bundleno = 226 (0xe2), region = 72 }
  0xae   : > { %s530_s3 = scalar_lea.vmem %s3503_s6, %s3223_s2  ;;  %s533_s28 = scalar_lea.vmem %s3505_s8, %s3223_s2 }
  0xaf   : > { %s536_s15 = scalar_lea.vmem %s3507_s10, %s3223_s2 }
  0xb2   : > { %v578_v0 = vld [vmem:[%s3497_s0] sm:$0xff]  ;;  %v580_v1 = vld [vmem:[%s3497_s0 + $0x8] sm:$0xff] }
  0xb3   : > { %579 = vst [vmem:[#allocation2] sm:$0xff] %v578_v0  ;;  %581 = vst [vmem:[#allocation2 + $0x8] sm:$0xff] %v580_v1 }
  0xb4   : > { %589 = vsyncadd [#allocation7], 256  ;;  %v624_v2 = vld [vmem:[%s3498_s1] sm:$0xff]  ;;  %v626_v3 = vld [vmem:[%s3498_s1 + $0x8] sm:$0xff] }
  0xb5   : > { %625 = vst [vmem:[#allocation3 + $0x8] sm:$0xff] %v624_v2  ;;  %627 = vst [vmem:[#allocation3 + $0x10] sm:$0xff] %v626_v3  ;;  %v628_v4 = vld [vmem:[%s3498_s1 + $0x10] sm:$0xff]  ;;  %v630_v5 = vld [vmem:[%s3498_s1 + $0x18] sm:$0xff] }
  0xb6   : > { %629 = vst [vmem:[#allocation3] sm:$0xff] %v628_v4  ;;  %631 = vst [vmem:[#allocation3 + $0x18] sm:$0xff] %v630_v5 }
  0xb7   : > { %639 = vsyncadd [#allocation7 + $0x1], 512  ;;  %s3564_s4 = sld [smem:[#allocation43_spill]] }
  0xbd   : > { %v674_v6 = vld [vmem:[%s3564_s4] sm:$0xff]  ;;  %v676_v7 = vld [vmem:[%s3564_s4 + $0x8] sm:$0xff] }
  0xbe   : > { %675 = vst [vmem:[#allocation4] sm:$0xff] %v674_v6  ;;  %677 = vst [vmem:[#allocation4 + $0x8] sm:$0xff] %v676_v7 }
  0xbf   : > { %685 = vsyncadd [#allocation7 + $0x2], 256  ;;  %s3565_s7 = sld [smem:[#allocation44_spill]] }
  0xc5   : > { %v720_v8 = vld [vmem:[%s3565_s7] sm:$0xff]  ;;  %v722_v9 = vld [vmem:[%s3565_s7 + $0x8] sm:$0xff] }
  0xc6   : > { %721 = vst [vmem:[#allocation5] sm:$0xff] %v720_v8  ;;  %723 = vst [vmem:[#allocation5 + $0x8] sm:$0xff] %v722_v9 }
  0xc7   : > { %731 = vsyncadd [#allocation7 + $0x3], 256  ;;  %s2892_s25 = smov [#allocation6]  }
  0xc8   : > { %s740_s23 = sshll.u32 %s2892_s25, 4  ;;  %s741_s23 = int_to_ptr.vmem [resolvable:$true] %s740_s23 }
  0xc9   : > { %s2760_s21 = scalar_lea.vmem %s741_s23, 128  ;;  %p2765_p3 = scmp.lt.s32.totalorder %s741_s23, %s741_s23 }
  0xca   : > { %p2761_p1 = scmp.ne.s32.totalorder %s741_s23, %s2760_s21  ;;  %p2766_p6 = scmp.lt.s32.totalorder %s2760_s21, %s2760_s21 }
  0xcc   : > { %p2767_p9 = por %p2766_p6, %p2765_p3 }
  0xce   : > { %p2768_p12 = pnand %p2767_p9, %p2761_p1 }
  0xd0   : > { %2771 = shalt.err (!%p2768_p12)  }
  0xd1   : > { %s3566_s13 = sld [smem:[#allocation45_spill]] }
  0xd7   : > { %743 = dma.hbm_to_vmem [thread:$0]  %s3566_s13, 128, %s741_s23, [#allocation7 + $0x4] }
  0xd8   : > { %2852 = dma.done.wait [#allocation7], 256 }
  0xd9   : > { %2853 = vsyncadd [#allocation7], 4294967040 }
  0xda   : > { %2854 = dma.done.wait [#allocation7 + $0x1], 512 }
  0xdb   : > { %2855 = vsyncadd [#allocation7 + $0x1], 4294966784 }
  0xdc   : > { %2856 = dma.done.wait [#allocation7 + $0x2], 256 }
  0xdd   : > { %2857 = vsyncadd [#allocation7 + $0x2], 4294967040 }
  0xde   : > { %2858 = dma.done.wait [#allocation7 + $0x3], 256 }
  0xdf   : > { %2859 = vsyncadd [#allocation7 + $0x3], 4294967040 }
  0xe0   : > { %2860 = dma.done.wait [#allocation7 + $0x4], 128 }
  0xe1   : > { %2861 = vsyncadd [#allocation7 + $0x4], 4294967168 }
  0xe2 PF: > { %v3279_v10 = vld [vmem:[#allocation2] sm:$0xff]  ;;  %v3281_v11 = vld [vmem:[#allocation2 + $0x8] sm:$0xff]  ;;  %vm783_vm0 = vcmask 130048   ;;  %v2579_v13 = vld [vmem:[#allocation4] sm:$0xff]   ;;  %vm2894_vm1 = vmmov 0   ;;  %vm1401_vm2 = vcmask 261120  }
  0xe3   : > { %v3285_v12 = vpack.c.bf16 %v3281_v11, %v3279_v10  ;;  %2345 = vmatprep.mubr.msk.bf16.mxu0 %vm783_vm0, %v2579_v13  ;;  %v2580_v14 = vld [vmem:[#allocation4 + $0x8] sm:$0xff]   ;;  %v2581_v15 = vld [vmem:[#allocation5] sm:$0xff]   ;;  %v2583_v16 = vld [vmem:[%s3195_s29 + $0x78] sm:$0xff]   ;;  %s3567_s20 = sld [smem:[#allocation41_spill]]  ;;  %s1858_s26 = sshll.u32 %s3243_s11, 4  ;;  %s3410_s26 = int_to_ptr.vmem [resolvable:$true] %s1858_s26 }
  0xe4   : > { %v2586_v17 = vld [vmem:[%s3195_s29 + $0x38] sm:$0xff]   ;;  %v2588_v18 = vld [vmem:[%s3195_s29 + $0x30] sm:$0xff]   ;;  %v2590_v20 = vld [vmem:[%s3195_s29 + $0x28] sm:$0xff]   ;;  %s3568_s23 = sld [smem:[#allocation51_spill]]  ;;  %s2772_s24 = scalar_lea.vmem %s3410_s26, 256 }
  0xe5   : > { %2343 = vmatprep.subr.bf16.mxu0 %v3285_v12  ;;  %2375 = vmatprep.subr.bf16.mxu1 %v2586_v17  ;;  %v2582_v19 = vld [vmem:[#allocation5 + $0x8] sm:$0xff]   ;;  %v2592_v22 = vld [vmem:[%s3195_s29 + $0x20] sm:$0xff]   ;;  %v2585_v23 = vld [vmem:[%s3195_s29 + $0x68] sm:$0xff]   ;;  %p2773_p0 = scmp.ne.s32.totalorder %s3410_s26, %s2772_s24  ;;  %s2895_s13 = smov [#allocation17]  }
  0xe6   : > { %2344 = vmatpush3.bf16.msra.mxu0 %v3285_v12  ;;  %2376 = vmatpush3.bf16.msra.mxu1 %v2586_v17  ;;  %v2584_v21 = vld [vmem:[%s3195_s29 + $0x70] sm:$0xff]   ;;  %v2587_v24 = vld [vmem:[%s3195_s29 + $0x60] sm:$0xff]   ;;  %v2589_v25 = vld [vmem:[%s3195_s29 + $0x58] sm:$0xff]  }
  0xe7   : > { %2349 = vmatprep.subr.bf16.mxu0 %v3285_v12  ;;  %2377 = vmatprep.subr.bf16.mxu1 %v2588_v18  ;;  %v2591_v26 = vld [vmem:[%s3195_s29 + $0x50] sm:$0xff]   ;;  %v2593_v27 = vld [vmem:[%s3195_s29 + $0x48] sm:$0xff]   ;;  %v2594_v28 = vld [vmem:[%s3195_s29 + $0x18] sm:$0xff]  }
  0xe8   : > { %v2595_v29 = vld [vmem:[%s3195_s29 + $0x40] sm:$0xff]   ;;  %v2596_v30 = vld [vmem:[%s3195_s29 + $0x10] sm:$0xff]   ;;  %v2597_v31 = vld [vmem:[%s3195_s29 + $0xb8] sm:$0xff]  }
  0xe9   : > { %2346 = vmatmul.mubr.msk.bf16.vlgmr.msra.gmra.mxu0 %vm783_vm0, %v2580_v14  ;;  %v2598_v32 = vld [vmem:[%s3195_s29 + $0x8] sm:$0xff]   ;;  %v2600_v33 = vld [vmem:[%s3195_s29] sm:$0xff]   ;;  %v2599_v44 = vld [vmem:[%s3195_s29 + $0xb0] sm:$0xff]   ;;  %p3569_p11 = scmp.ne.s32.totalorder %s3567_s20, 0 }
  0xea   : > { %2350 = vmatpush3.bf16.msra.mxu0 %v3285_v12  ;;  %2351 = vmatprep.mubr.msk.bf16.mxu0 %vm783_vm0, %v2581_v15  ;;  %v762_v37 = vld [vmem:[#allocation3 + $0x8] sm:$0xff]  ;;  %v763_v38 = vld [vmem:[#allocation3 + $0x10] sm:$0xff]  ;;  %v2603_v52 = vld [vmem:[%s3195_s29 + $0x98] sm:$0xff]  }
  0xeb   : > { %2355 = vmatprep.subr.bf16.mxu0 %v2583_v16  ;;  %2378 = vmatpush3.bf16.msra.mxu1 %v2588_v18  ;;  %v767_v41 = vpack.c.bf16 %v763_v38, %v762_v37  ;;  %v2601_v47 = vld [vmem:[%s3195_s29 + $0xa8] sm:$0xff]   ;;  %v2602_v51 = vld [vmem:[%s3195_s29 + $0xa0] sm:$0xff]   ;;  %v2604_v53 = vld [vmem:[%s3195_s29 + $0x90] sm:$0xff]   ;;  %v2893_v37 = vmov 0.0   ;;  %p2774_p4 = pnand %p2773_p0, %p3569_p11 }
  0xec   : > { %2379 = vmatprep.subr.bf16.mxu1 %v2590_v20  ;;  %v2605_v54 = vld [vmem:[%s3195_s29 + $0x88] sm:$0xff]   ;;  %v2606_v55 = vld [vmem:[%s3195_s29 + $0x80] sm:$0xff]   ;;  %v764_v56 = vld [vmem:[#allocation3] sm:$0xff]  ;;  %s2776_s29 = sshll.u32 %s2895_s13, 4  ;;  %s2777_s29 = int_to_ptr.vmem [resolvable:$false] %s2776_s29 }
  0xed   : > { %v765_v57 = vld [vmem:[#allocation3 + $0x18] sm:$0xff]  ;;  %v2607_v59 = vld [vmem:[%s3203_s22 + $0x38] sm:$0xff]   ;;  %v2609_v61 = vld [vmem:[%s3203_s22 + $0x28] sm:$0xff]   ;;  %p2775_p5 = pneg %p2774_p4  ;;  %p2779_p7 = scmp.lt.s32.totalorder %s3410_s26, %s2777_s29 }
  0xee   : > { %v768_v58 = vpack.c.bf16 %v765_v57, %v764_v56  ;;  %v2608_v60 = vld [vmem:[%s3203_s22 + $0x30] sm:$0xff]   ;;  %v2610_v62 = vld [vmem:[%s3203_s22 + $0x20] sm:$0xff]   ;;  %v2611_v63 = vld [vmem:[%s3203_s22 + $0x18] sm:$0xff]  }
  0xef   : > { %2380 = vmatpush3.bf16.msra.mxu1 %v2590_v20  ;;  %v2612_v0 = vld [vmem:[%s3203_s22 + $0x10] sm:$0xff]   ;;  %v2613_v1 = vld [vmem:[%s3203_s22 + $0x8] sm:$0xff]   ;;  %v2614_v2 = vld [vmem:[%s3203_s22] sm:$0xff]  }
  0xf0   : > { %2381 = vmatprep.subr.bf16.mxu1 %v2592_v22  ;;  %v2618_v38 = vld [vmem:[%s3210_s19 + $0x78] sm:$0xff]   ;;  %v2617_v57 = vld [vmem:[%s3210_s19 + $0x30] sm:$0xff]  }
  0xf1   : > { %2352 = vmatmul.mubr.msk.bf16.vlgmr.msra.gmra.mxu0 %vm783_vm0, %v2582_v19  ;;  %v2616_v56 = vld [vmem:[%s3210_s19 + $0x38] sm:$0xff]  }
  0xf2   : > { %2356 = vmatpush3.bf16.msra.mxu0 %v2583_v16 }
  0xf3   : > { %2357 = vmatprep.subr.bf16.mxu0 %v2584_v21  ;;  %2382 = vmatpush3.bf16.msra.mxu1 %v2592_v22 }
  0xf4   : > { %2383 = vmatprep.subr.bf16.mxu1 %v2594_v28 }
  0xf6   : > { %2358 = vmatpush3.bf16.msra.mxu0 %v2584_v21 }
  0xf7   : > { %2359 = vmatprep.subr.bf16.mxu0 %v2585_v23  ;;  %2384 = vmatpush3.bf16.msra.mxu1 %v2594_v28 }
  0xf8   : > { %2385 = vmatprep.subr.bf16.mxu1 %v2596_v30 }
  0xfa   : > { %2360 = vmatpush3.bf16.msra.mxu0 %v2585_v23  ;;  %v2183_v23 = vld [vmem:[%s530_s3] ss:$0 sm:$0xff] }
  0xfb   : > { %2361 = vmatprep.subr.bf16.mxu0 %v2587_v24  ;;  %2386 = vmatpush3.bf16.msra.mxu1 %v2596_v30 }
  0xfc   : > { %2387 = vmatprep.subr.bf16.mxu1 %v2598_v32 }
  0xfe   : > { %2362 = vmatpush3.bf16.msra.mxu0 %v2587_v24 }
  0xff   : > { %2363 = vmatprep.subr.bf16.mxu0 %v2589_v25  ;;  %2388 = vmatpush3.bf16.msra.mxu1 %v2598_v32 }
 0x100   : > { %2389 = vmatprep.subr.bf16.mxu1 %v2600_v33 }
 0x102   : > { %2364 = vmatpush3.bf16.msra.mxu0 %v2589_v25 }
 0x103   : > { %2365 = vmatprep.subr.bf16.mxu0 %v2591_v26  ;;  %2390 = vmatpush3.bf16.msra.mxu1 %v2600_v33 }
 0x104   : > { %2415 = vmatprep.subr.bf16.mxu1 %v2607_v59 }
 0x106   : > { %2366 = vmatpush3.bf16.msra.mxu0 %v2591_v26 }
 0x107   : > { %2367 = vmatprep.subr.bf16.mxu0 %v2593_v27 }
 0x10a   : > { %2368 = vmatpush3.bf16.msra.mxu0 %v2593_v27 }
 0x10b   : > { %2369 = vmatprep.subr.bf16.mxu0 %v2595_v29 }
 0x10e   : > { %2370 = vmatpush3.bf16.msra.mxu0 %v2595_v29 }
 0x10f   : > { %2395 = vmatprep.subr.bf16.mxu0 %v2597_v31 }
 0x1a9   : > { %v2347_v34 = vpop.f32.mrf.mxu0 }
 0x1ab   : > { %v824_v35 = vpop.f32.mrf.mxu0 }
 0x1ad   : > { %v2348_v36 = vpop.f32.mrf.mxu0 }
 0x1ae   : > { %v927_v42 = vpack.c.bf16 %v2348_v36, %v2347_v34 }
 0x1af   : > { %v827_v39 = vpop.f32.mrf.mxu0 }
 0x1b0   : > { %v926_v40 = vpack.c.bf16 %v827_v39, %v824_v35  ;;  %v2620_v39 = vld [vmem:[%s3210_s19 + $0x70] sm:$0xff]  }
 0x1b1   : > { %v2353_v43 = vpop.f32.mrf.mxu0 }
 0x1b2   : > { %2371 = vmatprep.mubr.bf16.mxu0 %v926_v40  ;;  %v2622_v40 = vld [vmem:[%s3210_s19 + $0x68] sm:$0xff]  }
 0x1b3   : > { %v893_v45 = vpop.f32.mrf.mxu0  ;;  %2372 = vmatmul.mubr.bf16.vlgmr.msra.gmra.mxu0 %v927_v42  ;;  %v2626_v42 = vld [vmem:[%s3210_s19 + $0x58] sm:$0xff]  }
 0x1b4   : > { %2396 = vmatpush3.bf16.msra.mxu0 %v2597_v31  ;;  %2411 = vmatprep.mubr.bf16.mxu0 %v767_v41  ;;  %v2624_v41 = vld [vmem:[%s3210_s19 + $0x60] sm:$0xff]  }
 0x1b5   : > { %v2354_v46 = vpop.f32.mrf.mxu0  ;;  %2397 = vmatprep.subr.bf16.mxu0 %v2599_v44 }
 0x1b6   : > { %v909_v48 = vpack.c.bf16 %v2354_v46, %v2353_v43  ;;  %v2628_v43 = vld [vmem:[%s3210_s19 + $0x50] sm:$0xff]  }
 0x1b7   : > { %v896_v49 = vpop.f32.mrf.mxu0 }
 0x1b8   : > { %2398 = vmatpush3.bf16.msra.mxu0 %v2599_v44  ;;  %v908_v50 = vpack.c.bf16 %v896_v49, %v893_v45  ;;  %v2184_v44 = vld [vmem:[%s533_s28] ss:$0 sm:$0xff] }
 0x1b9   : > { %2399 = vmatprep.subr.bf16.mxu0 %v2601_v47 }
 0x1ba   : > { %2391 = vmatprep.mubr.bf16.mxu1 %v908_v50 }
 0x1bb   : > { %2392 = vmatmul.mubr.bf16.vlgmr.msra.gmra.mxu1 %v909_v48 }
 0x1bc   : > { %2400 = vmatpush3.bf16.msra.mxu0 %v2601_v47  ;;  %2416 = vmatpush3.bf16.msra.mxu1 %v2607_v59  ;;  %v2621_v59 = vld [vmem:[%s3210_s19 + $0x20] sm:$0xff]  }
 0x1bd   : > { %2401 = vmatprep.subr.bf16.mxu0 %v2602_v51  ;;  %2417 = vmatprep.subr.bf16.mxu1 %v2608_v60 }
 0x1c0   : > { %2402 = vmatpush3.bf16.msra.mxu0 %v2602_v51  ;;  %2418 = vmatpush3.bf16.msra.mxu1 %v2608_v60  ;;  %v2623_v60 = vld [vmem:[%s3210_s19 + $0x18] sm:$0xff]  }
 0x1c1   : > { %2403 = vmatprep.subr.bf16.mxu0 %v2603_v52  ;;  %2419 = vmatprep.subr.bf16.mxu1 %v2609_v61 }
 0x1c4   : > { %2404 = vmatpush3.bf16.msra.mxu0 %v2603_v52  ;;  %2420 = vmatpush3.bf16.msra.mxu1 %v2609_v61  ;;  %v2625_v61 = vld [vmem:[%s3210_s19 + $0x10] sm:$0xff]  }
 0x1c5   : > { %2405 = vmatprep.subr.bf16.mxu0 %v2604_v53  ;;  %2421 = vmatprep.subr.bf16.mxu1 %v2610_v62 }
 0x1c8   : > { %2406 = vmatpush3.bf16.msra.mxu0 %v2604_v53  ;;  %2422 = vmatpush3.bf16.msra.mxu1 %v2610_v62  ;;  %v2627_v62 = vld [vmem:[%s3210_s19 + $0x8] sm:$0xff]  }
 0x1c9   : > { %2407 = vmatprep.subr.bf16.mxu0 %v2605_v54  ;;  %2423 = vmatprep.subr.bf16.mxu1 %v2611_v63 }
 0x1cc   : > { %2408 = vmatpush3.bf16.msra.mxu0 %v2605_v54  ;;  %2424 = vmatpush3.bf16.msra.mxu1 %v2611_v63  ;;  %v2629_v63 = vld [vmem:[%s3210_s19] sm:$0xff]  }
 0x1cd   : > { %2409 = vmatprep.subr.bf16.mxu0 %v2606_v55  ;;  %2425 = vmatprep.subr.bf16.mxu1 %v2612_v0 }
 0x1d0   : > { %2410 = vmatpush3.bf16.msra.mxu0 %v2606_v55  ;;  %2426 = vmatpush3.bf16.msra.mxu1 %v2612_v0  ;;  %v2615_v55 = vld [vmem:[#allocation6] sm:$0xff]   ;;  %v2630_v0 = vld [vmem:[%s3210_s19 + $0x48] sm:$0xff]  }
 0x1d1   : > { %2427 = vmatprep.subr.bf16.mxu1 %v2613_v1  ;;  %2435 = vmatprep.subr.bf16.mxu0 %v2893_v37 }
 0x1d3   : > { %2412 = vmatmul.mubr.bf16.vlgmr.msra.gmra.mxu0 %v768_v58  ;;  %v2619_v58 = vld [vmem:[%s3210_s19 + $0x28] sm:$0xff]  }
 0x1d4   : > { %2428 = vmatpush3.bf16.msra.mxu1 %v2613_v1  ;;  %2439 = vmatprep.mubr.msk.bf16.mxu0 %vm2894_vm1, %v2893_v37  ;;  %v2631_v1 = vld [vmem:[%s3210_s19 + $0x40] sm:$0xff]  }
 0x1d5   : > { %2429 = vmatprep.subr.bf16.mxu1 %v2614_v2 }
 0x1d8   : > { %2430 = vmatpush3.bf16.msra.mxu1 %v2614_v2 }
 0x1d9   : > { %2443 = vmatprep.subr.bf16.mxu1 %v2893_v37 }
 0x273   : > { %v2373_v3 = vpop.f32.mrf.mxu0 }
 0x275   : > { %v1026_v4 = vpop.f32.mrf.mxu0 }
 0x277   : > { %v2374_v6 = vpop.f32.mrf.mxu0 }
 0x279   : > { %v1029_v8 = vpop.f32.mrf.mxu0 }
 0x27b   : > { %v2393_v5 = vpop.f32.mrf.mxu1 }
 0x27c   : > { %v1132_v15 = vadd.f32 %v2393_v5, %v2373_v3  ;;  %v2632_v5 = vld [vmem:[%s3213_s18 + $0x38] sm:$0xff]  }
 0x27d   : > { %v1123_v7 = vpop.f32.mrf.mxu1 }
 0x27e   : > { %v1124_v14 = vadd.f32 %v1123_v7, %v1026_v4 }
 0x27f   : > { %v2394_v9 = vpop.f32.mrf.mxu1 }
 0x280   : > { %v1135_v18 = vadd.f32 %v2394_v9, %v2374_v6  ;;  %v2635_v9 = vld [vmem:[%s3213_s18 + $0x20] sm:$0xff]  }
 0x281   : > { %v1126_v16 = vpop.f32.mrf.mxu1 }
 0x282   : > { %v1127_v22 = vadd.f32 %v1126_v16, %v1029_v8  ;;  %v2634_v8 = vld [vmem:[%s3213_s18 + $0x28] sm:$0xff]  }
 0x293   : > { %v2413_v13 = vpop.f32.mrf.mxu0 }
 0x294   : > { %v1253_v20 = vadd.f32 %v2413_v13, %v1132_v15  ;;  %v2636_v13 = vld [vmem:[%s3213_s18 + $0x18] sm:$0xff]  }
 0x295   : > { %v1236_v17 = vpop.f32.mrf.mxu0 }
 0x296   : > { %v1251_v19 = vadd.f32 %v1236_v17, %v1124_v14  ;;  %v1264_v29 = vadd.f32 %v2183_v23, %v1253_v20  ;;  %v2639_v20 = vld [vmem:[%s3213_s18] sm:$0xff]  }
 0x297   : > { %v2414_v21 = vpop.f32.mrf.mxu0 }
 0x298   : > { %v1254_v24 = vadd.f32 %v2414_v21, %v1135_v18  ;;  %v1262_v26 = vadd.f32 %v2183_v23, %v1251_v19  ;;  %v1268_v34 = vmax.f32 %v1264_v29, 0.0  ;;  %v2637_v18 = vld [vmem:[%s3213_s18 + $0x10] sm:$0xff]   ;;  %v2638_v19 = vld [vmem:[%s3213_s18 + $0x8] sm:$0xff]  }
 0x299   : > { %v1239_v25 = vpop.f32.mrf.mxu0 }
 0x29a   : > { %v1265_v27 = vadd.f32 %v2183_v23, %v1254_v24  ;;  %v1252_v28 = vadd.f32 %v1239_v25, %v1127_v22  ;;  %v1266_v32 = vmax.f32 %v1262_v26, 0.0 }
 0x29c   : > { %v1263_v30 = vadd.f32 %v2183_v23, %v1252_v28  ;;  %v1269_v31 = vmax.f32 %v1265_v27, 0.0  ;;  %v2211_v23 = vld [vmem:[%s536_s15] ss:$0 sm:$0xff]  ;;  %s1829_s15 = scalar_lea.sflag [#allocation18], %s3191_s14 }
 0x29e   : > { %v1267_v33 = vmax.f32 %v1263_v30, 0.0  ;;  %v1271_v36 = vpack.c.bf16 %v1269_v31, %v1268_v34 }
 0x2a0   : > { %v1270_v35 = vpack.c.bf16 %v1267_v33, %v1266_v32 }
 0x2a2   : > { %2431 = vmatprep.mubr.bf16.mxu1 %v1270_v35 }
 0x2a3   : > { %2432 = vmatmul.mubr.bf16.vlgmr.msra.gmra.mxu1 %v1271_v36 }
 0x2a4   : > { %2459 = vmatprep.mubr.msk.bf16.mxu1 %vm2894_vm1, %v2893_v37  ;;  %2444 = vmatpush3.bf16.msra.mxu1 %v2618_v38 }
 0x2a5   : > { %2445 = vmatprep.subr.bf16.mxu1 %v2893_v37 }
 0x2a8   : > { %2446 = vmatpush3.bf16.msra.mxu1 %v2620_v39 }
 0x2a9   : > { %2447 = vmatprep.subr.bf16.mxu1 %v2893_v37 }
 0x2ac   : > { %2448 = vmatpush3.bf16.msra.mxu1 %v2622_v40 }
 0x2ad   : > { %2449 = vmatprep.subr.bf16.mxu1 %v2893_v37 }
 0x2b0   : > { %2450 = vmatpush3.bf16.msra.mxu1 %v2624_v41 }
 0x2b1   : > { %2451 = vmatprep.subr.bf16.mxu1 %v2893_v37 }
 0x2b4   : > { %2452 = vmatpush3.bf16.msra.mxu1 %v2626_v42 }
 0x2b5   : > { %2453 = vmatprep.subr.bf16.mxu1 %v2893_v37 }
 0x2b8   : > { %2454 = vmatpush3.bf16.msra.mxu1 %v2628_v43 }
 0x2b9   : > { %2455 = vmatprep.subr.bf16.mxu1 %v2893_v37 }
 0x2bc   : > { %2456 = vmatpush3.bf16.msra.mxu1 %v2630_v0 }
 0x2bd   : > { %2457 = vmatprep.subr.bf16.mxu1 %v2893_v37 }
 0x2c0   : > { %2458 = vmatpush3.bf16.msra.mxu1 %v2631_v1 }
 0x2c1   : > { %2483 = vmatprep.subr.bf16.mxu1 %v2893_v37 }
 0x363   : > { %v2433_v45 = vpop.f32.mrf.mxu1 }
 0x364   : > { %v1386_v46 = vadd.f32 %v2433_v45, %v2184_v44 }
 0x365   : > { %v1377_v47 = vpop.f32.mrf.mxu1 }
 0x366   : > { %1793 = vst [vmem:[#allocation3] sm:$0xff] %v1386_v46  ;;  %v1378_v48 = vadd.f32 %v2184_v44, %v1377_v47 }
 0x367   : > { %v2434_v49 = vpop.f32.mrf.mxu1 }
 0x368   : > { %1791 = vst [vmem:[#allocation3 + $0x8] sm:$0xff] %v1378_v48  ;;  %v1389_v50 = vadd.f32 %v2434_v49, %v2184_v44 }
 0x369   : > { %v1380_v51 = vpop.f32.mrf.mxu1 }
 0x36a   : > { %v1395_v52 = vpack.c.bf16 %v1389_v50, %v1386_v46  ;;  %1794 = vst [vmem:[#allocation3 + $0x18] sm:$0xff] %v1389_v50  ;;  %v1381_v53 = vadd.f32 %v2184_v44, %v1380_v51 }
 0x36c   : > { %2266 = vst [vmem:[%s3243_s11 + $0x8] sm:$0xff] %v1395_v52   ;;  %v1394_v54 = vpack.c.bf16 %v1381_v53, %v1378_v48  ;;  %1792 = vst [vmem:[#allocation3 + $0x10] sm:$0xff] %v1381_v53  ;;  %2436 = vmatpush3.bf16.msra.mxu0 %v1395_v52 }
 0x36d   : > { %2437 = vmatprep.subr.bf16.mxu0 %v2893_v37 }
 0x36e   : > { %2260 = vst [vmem:[%s3243_s11] sm:$0xff] %v1394_v54   ;;  %s2778_s11 = scalar_lea.vmem %s2777_s29, 512 }
 0x36f   : > { %p2780_p2 = scmp.lt.s32.totalorder %s2778_s11, %s2772_s24 }
 0x370   : > { %2438 = vmatpush3.bf16.msra.mxu0 %v1394_v54 }
 0x371   : > { %2463 = vmatprep.subr.bf16.mxu0 %v2893_v37  ;;  %p2781_p8 = por %p2780_p2, %p2779_p7 }
 0x373   : > { %2440 = vmatmul.mubr.msk.bf16.vlgmr.msra.gmra.mxu0 %vm1401_vm2, %v2615_v55  ;;  %p2782_p13 = pnand %p2781_p8, %p2775_p5 }
 0x374   : > { %2464 = vmatpush3.bf16.msra.mxu0 %v2616_v56  ;;  %2479 = vmatprep.mubr.msk.bf16.mxu0 %vm2894_vm1, %v2893_v37 }
 0x375   : > { %2465 = vmatprep.subr.bf16.mxu0 %v2893_v37 }
 0x378   : > { %2466 = vmatpush3.bf16.msra.mxu0 %v2617_v57 }
 0x379   : > { %2467 = vmatprep.subr.bf16.mxu0 %v2893_v37 }
 0x37c   : > { %2468 = vmatpush3.bf16.msra.mxu0 %v2619_v58 }
 0x37d   : > { %2469 = vmatprep.subr.bf16.mxu0 %v2893_v37 }
 0x380   : > { %2470 = vmatpush3.bf16.msra.mxu0 %v2621_v59 }
 0x381   : > { %2471 = vmatprep.subr.bf16.mxu0 %v2893_v37 }
 0x384   : > { %2472 = vmatpush3.bf16.msra.mxu0 %v2623_v60 }
 0x385   : > { %2473 = vmatprep.subr.bf16.mxu0 %v2893_v37 }
 0x388   : > { %2474 = vmatpush3.bf16.msra.mxu0 %v2625_v61 }
 0x389   : > { %2475 = vmatprep.subr.bf16.mxu0 %v2893_v37 }
 0x38c   : > { %2476 = vmatpush3.bf16.msra.mxu0 %v2627_v62 }
 0x38d   : > { %2477 = vmatprep.subr.bf16.mxu0 %v2893_v37 }
 0x390   : > { %2478 = vmatpush3.bf16.msra.mxu0 %v2629_v63 }
 0x393   : > { %2480 = vmatmul.mubr.bf16.vlgmr.msra.gmra.mxu0 %v3285_v12  ;;  %v2633_v12 = vld [vmem:[%s3213_s18 + $0x30] sm:$0xff]   ;;  %s2250_s18 = sshll.u32 %s2995_s17, 8 }
 0x394   : > { %s3408_s27 = scalar_lea.hbm %s3568_s23, %s2250_s18 }
 0x433   : > { %v1439_v2 = vpop.f32.mrf.mxu0 }
 0x435   : > { %v2441_v3 = vpop.f32.mrf.mxu0 }
 0x437   : > { %v1442_v4 = vpop.f32.mrf.mxu0 }
 0x438   : > { %v1462_v6 = vpack.c.bf16 %v1442_v4, %v1439_v2 }
 0x439   : > { %v2442_v7 = vpop.f32.mrf.mxu0 }
 0x43a   : > { %2460 = vmatmul.mubr.bf16.vlgmr.msra.gmra.mxu1 %v1462_v6 }
 0x43b   : > { %2484 = vmatpush3.bf16.msra.mxu1 %v2632_v5  ;;  %2499 = vmatprep.mubr.msk.bf16.mxu1 %vm2894_vm1, %v2893_v37 }
 0x43c   : > { %2485 = vmatprep.subr.bf16.mxu1 %v2893_v37 }
 0x43f   : > { %2486 = vmatpush3.bf16.msra.mxu1 %v2633_v12 }
 0x440   : > { %2487 = vmatprep.subr.bf16.mxu1 %v2893_v37 }
 0x443   : > { %2488 = vmatpush3.bf16.msra.mxu1 %v2634_v8 }
 0x444   : > { %2489 = vmatprep.subr.bf16.mxu1 %v2893_v37 }
 0x447   : > { %2490 = vmatpush3.bf16.msra.mxu1 %v2635_v9 }
 0x448   : > { %2491 = vmatprep.subr.bf16.mxu1 %v2893_v37 }
 0x44b   : > { %2492 = vmatpush3.bf16.msra.mxu1 %v2636_v13 }
 0x44c   : > { %2493 = vmatprep.subr.bf16.mxu1 %v2893_v37 }
 0x44f   : > { %2494 = vmatpush3.bf16.msra.mxu1 %v2637_v18 }
 0x450   : > { %2495 = vmatprep.subr.bf16.mxu1 %v2893_v37 }
 0x453   : > { %v1650_v14 = vpop.f32.mrf.mxu0  ;;  %2496 = vmatpush3.bf16.msra.mxu1 %v2638_v19 }
 0x454   : > { %2497 = vmatprep.subr.bf16.mxu1 %v2893_v37 }
 0x455   : > { %v2481_v15 = vpop.f32.mrf.mxu0 }
 0x457   : > { %v1653_v16 = vpop.f32.mrf.mxu0  ;;  %2498 = vmatpush3.bf16.msra.mxu1 %v2639_v20 }
 0x459   : > { %v2482_v17 = vpop.f32.mrf.mxu0 }
 0x4fa   : > { %v1561_v21 = vpop.f32.mrf.mxu1 }
 0x4fb   : > { %v1651_v22 = vadd.f32 %v1650_v14, %v1561_v21 }
 0x4fc   : > { %v2461_v24 = vpop.f32.mrf.mxu1 }
 0x4fd   : > { %v1664_v26 = vadd.f32 %v2211_v23, %v1651_v22 }
 0x4fe   : > { %v1564_v25 = vpop.f32.mrf.mxu1 }
 0x4ff   : > { %v1654_v27 = vadd.f32 %v1653_v16, %v1564_v25  ;;  %v1666_v30 = vmax.f32 %v1664_v26, 0.0 }
 0x500   : > { %v2462_v28 = vpop.f32.mrf.mxu1 }
 0x501   : > { %v1665_v29 = vadd.f32 %v2211_v23, %v1654_v27 }
 0x503   : > { %v1667_v31 = vmax.f32 %v1665_v29, 0.0 }
 0x505   : > { %v1668_v32 = vpack.c.bf16 %v1667_v31, %v1666_v30 }
 0x507   : > { %2500 = vmatmul.mubr.bf16.vlgmr.msra.gmra.mxu1 %v1668_v32 }
 0x508   : > { %2785 = shalt.err (!%p2782_p13)
}
 0x509   : > { %s2786_s22 = scalar_lea.hbm %s3408_s27, 256  ;;  %s2790_s19 = scalar_lea.hbm %s3568_s23, 512 }
 0x50a   : > { %p2787_p10 = scmp.ne.s32.totalorder %s3408_s27, %s2786_s22  ;;  %p2791_p6 = scmp.lt.s32.totalorder %s3408_s27, %s3568_s23 }
 0x50b   : > { %p2792_p9 = scmp.lt.s32.totalorder %s2790_s19, %s2786_s22 }
 0x50c   : > { %p2788_p1 = pnand %p2787_p10, %p3569_p11 }
 0x50d   : > { %p2793_p12 = por %p2792_p9, %p2791_p6 }
 0x50e   : > { %p2789_p3 = pneg %p2788_p1 }
 0x510   : > { %p2794_p0 = pnand %p2793_p12, %p2789_p3 }
 0x512   : > { %2797 = shalt.err (!%p2794_p0)
}
 0x513   : > { %s2896_s5 = smov 64   ;;  %s2897_s25 = smov 4   ;;  %v1781_v37 = vmul.f32 0.5, %v3279_v10  ;;  %v1782_v44 = vmul.f32 0.5, %v3281_v11 }
 0x514   : > { %2515 = dma.vmem_to_hbm [thread:$0]  (%p3569_p11), %s3410_s26, 256, %s3408_s27, %s1829_s15, %s2896_s5, %s2896_s5, %s2897_s25  }
 0x515   : > { %s3570_s29 = scalar_lea.vmem %s3509_s12, %s3223_s2  ;;  %s2249_s2 = sshll.u32 %s2995_s17, 7 }
 0x516   : > { %v2212_v33 = vld [vmem:[%s3570_s29] ss:$0 sm:$0xff]  ;;  %s1842_s26 = sshll.u32 %s3241_s9, 4  ;;  %s3571_s11 = sld [smem:[#allocation50_spill]]  ;;  %s3452_s26 = int_to_ptr.vmem [resolvable:$true] %s1842_s26 }
 0x517   : > { %s1824_s3 = scalar_lea.sflag [#allocation10], %s3191_s14  ;;  %s2798_s21 = scalar_lea.vmem %s3452_s26, 128 }
 0x518   : > { %p2799_p4 = scmp.ne.s32.totalorder %s3452_s26, %s2798_s21  ;;  %s2898_s17 = smov [#allocation16]  }
 0x519   : > { %s2802_s19 = sshll.u32 %s2898_s17, 4  ;;  %s2803_s19 = int_to_ptr.vmem [resolvable:$false] %s2802_s19 }
 0x51a   : > { %p2800_p5 = pnand %p2799_p4, %p3569_p11  ;;  %s2804_s28 = scalar_lea.vmem %s2803_s19, 256 }
 0x51b   : > { %p2805_p2 = scmp.lt.s32.totalorder %s3452_s26, %s2803_s19  ;;  %p2806_p8 = scmp.lt.s32.totalorder %s2804_s28, %s2798_s21 }
 0x51c   : > { %s3450_s22 = scalar_lea.hbm %s3571_s11, %s2249_s2  ;;  %p2801_p7 = pneg %p2800_p5 }
 0x51d   : > { %p2807_p13 = por %p2806_p8, %p2805_p2 }
 0x51f   : > { %p2808_p10 = pnand %p2807_p13, %p2801_p7 }
 0x5c7   : > { %v1774_v34 = vpop.f32.mrf.mxu1 }
 0x5c8   : > { %v1775_v35 = vadd.f32 %v2212_v33, %v1774_v34 }
 0x5c9   : > { %v2501_v36 = vpop.f32.mrf.mxu1 }
 0x5ca   : > { %v1783_v38 = vmax.f32 %v1775_v35, 0.0 }
 0x5cb   : > { %v1777_v39 = vpop.f32.mrf.mxu1 }
 0x5cc   : > { %v1785_v40 = vmul.f32 0.5, %v1783_v38  ;;  %v1778_v41 = vadd.f32 %v2212_v33, %v1777_v39 }
 0x5cd   : > { %v2502_v42 = vpop.f32.mrf.mxu1 }
 0x5ce   : > { %v1787_v43 = vadd.f32 %v1785_v40, %v1781_v37  ;;  %v1784_v45 = vmax.f32 %v1778_v41, 0.0 }
 0x5d0   : > { %1789 = vst [vmem:[#allocation2] sm:$0xff] %v1787_v43  ;;  %v1786_v46 = vmul.f32 0.5, %v1784_v45 }
 0x5d2   : > { %v1788_v47 = vadd.f32 %v1786_v46, %v1782_v44 }
 0x5d4   : > { %1790 = vst [vmem:[#allocation2 + $0x8] sm:$0xff] %v1788_v47  ;;  %v2254_v48 = vpack.c.bf16 %v1788_v47, %v1787_v43 }
 0x5d6   : > { %2255 = vst [vmem:[%s3241_s9] sm:$0xff] %v2254_v48  }
 0x5d7   : > { %2811 = shalt.err (!%p2808_p10)
}
 0x5d8   : > { %s2812_s9 = scalar_lea.hbm %s3450_s22, 128  ;;  %s2816_s24 = scalar_lea.hbm %s3571_s11, 256 }
 0x5d9   : > { %p2813_p1 = scmp.ne.s32.totalorder %s3450_s22, %s2812_s9  ;;  %p2817_p9 = scmp.lt.s32.totalorder %s3450_s22, %s3571_s11 }
 0x5da   : > { %p2818_p12 = scmp.lt.s32.totalorder %s2816_s24, %s2812_s9 }
 0x5db   : > { %p2814_p3 = pnand %p2813_p1, %p3569_p11 }
 0x5dc   : > { %p2819_p0 = por %p2818_p12, %p2817_p9 }
 0x5dd   : > { %p2815_p6 = pneg %p2814_p3 }
 0x5df   : > { %p2820_p4 = pnand %p2819_p0, %p2815_p6 }
 0x5e1   : > { %2823 = shalt.err (!%p2820_p4)
}
 0x5e2   : > { %2514 = dma.vmem_to_hbm [thread:$0]  (%p3569_p11), %s3452_s26, 128, %s3450_s22, %s1824_s3, %s2896_s5, %s2896_s5, %s2897_s25  }
 0x5e3 PF: > { %s3572_s2 = sld [smem:[#allocation37_spill]]  ;;  %p3575_p7 = scmp.ge.s32.totalorder %s2884_s16, 2 }
 0x5e4   : > { %s3573_s27 = sld [smem:[#allocation42_spill]] }
 0x5e9   : > { %s1873_s15 = sand.u32 1, %s3572_s2  }
 0x5ea   : > { %p3574_p5 = scmp.ne.s32.totalorder %s3573_s27, 0  ;;  %s1874_s21 = scalar_lea.sflag [#allocation10], %s1873_s15 }
 0x5ec   : > { %p2532_p2 = pnand %p3575_p7, %p3574_p5 }
 0x5ee   : > { %p2533_p8 = pneg %p2532_p2 }
 0x5f0   : > { %2863 = dma.done.wait (%p2533_p8), %s1874_s21, 128  }
 0x5f1   : > { %2865 = vsyncadd (%p2533_p8), %s1874_s21, 4294967168  ;;  %s1883_s17 = scalar_lea.sflag [#allocation18], %s1873_s15 }
 0x5f2   : > { %2867 = dma.done.wait (%p2533_p8), %s1883_s17, 256  }
 0x5f3   : > { %2869 = vsyncadd (%p2533_p8), %s1883_s17, 4294967040  ;;  %s3576_s16 = sld [smem:[#allocation39_spill]]  ;;  %s3579_s29 = smov %s2876_s30 }
 0x5f4   : > { %s3577_s20 = sld [smem:[#allocation38_spill]] }
 0x5f5   : > { %s3578_s15 = sld [smem:[#allocation40_spill]] }
 0x5f9   : > { %p37_p11 = scmp.ge.s32.totalorder %s3576_s16, 4  }
 0x5fa   : > { %s3580_s30 = smov %s3577_s20 }
 0x5fb   :  { %39 = sbr.rel (!%p37_p11) target bundleno = 21 (0x15), region = 347 }
 0x600   :  { %1888 = vsyncpa [#allocation9], 1 }
 0x601   :  { %1890 = vsyncpa [#allocation9 + $0x1], 1 }
 0x602   :  { %1891 = vsyncpa [#allocation12], 1 }
 0x603   :  { %1893 = vsyncpa [#allocation12 + $0x1], 1 }
 0x604   :  { %1894 = vsyncpa [#allocation15], 1 }
 0x605   :  { %1896 = vsyncpa [#allocation15 + $0x1], 1 }
 0x606   :  { %1897 = vsyncpa [#allocation10], 1 }
 0x607   :  { %1899 = vsyncpa [#allocation10 + $0x1], 1 }
 0x608   :  { %1900 = vsyncpa [#allocation18], 1 }
 0x609   :  { %1902 = vsyncpa [#allocation18 + $0x1], 1 }
 0x60a   :  { %1903 = vsyncmov [#allocation7] }
 0x60d   :  { %s1904_s5 = vpop.sfrf %1903 }
 0x60e   :  { %p2235_p13 = scmp.ne.s32.totalorder %s1904_s5, 0 }
 0x610   :  { %1908 = shalt.err (%p2235_p13)  }
 0x611   :  { %1910 = vsyncmov [#allocation7 + $0x1] }
 0x614   :  { %s1911_s25 = vpop.sfrf %1910 }
 0x615   :  { %p2236_p10 = scmp.ne.s32.totalorder %s1911_s25, 0 }
 0x617   :  { %1915 = shalt.err (%p2236_p10)  }
 0x618   :  { %1917 = vsyncmov [#allocation7 + $0x2] }
 0x61b   :  { %s1918_s16 = vpop.sfrf %1917 }
 0x61c   :  { %p2237_p1 = scmp.ne.s32.totalorder %s1918_s16, 0 }
 0x61e   :  { %1922 = shalt.err (%p2237_p1)  }
 0x61f   :  { %1924 = vsyncmov [#allocation7 + $0x3] }
 0x622   :  { %s1925_s0 = vpop.sfrf %1924 }
 0x623   :  { %p2238_p3 = scmp.ne.s32.totalorder %s1925_s0, 0 }
 0x625   :  { %1929 = shalt.err (%p2238_p3)  }
 0x626   :  { %1931 = vsyncmov [#allocation7 + $0x4] }
 0x629   :  { %s1932_s1 = vpop.sfrf %1931 }
 0x62a   :  { %p2239_p6 = scmp.ne.s32.totalorder %s1932_s1, 0 }
 0x62c   :  { %1936 = shalt.err (%p2239_p6)  }

</bundles_post_ra>
